<compile_context>
chip_gen: v6e
topology: v6e:2x2x1
jax: 0.10.0
libtpu: 0.0.40
codegen_flags: <defaults>
</compile_context>

<pallas_src>
import jax
import jax.numpy as jnp
from jax import lax
from jax.experimental import pallas as pl
from jax.experimental.pallas import tpu as pltpu


def _lstm_model_kernel(x_ref, m_ref,
                       w_in_ref, b_in_ref,
                       wx4_f_ref, wx4_b_ref, b4_f_ref, b4_b_ref,
                       wh_bd_ref,
                       w_fc_f_ref, w_fc_b_ref, b_fc_ref,
                       w_out_ref, b_out_ref,
                       out_ref,
                       zxf_ref, zxb_ref):
    n, B, _ = m_ref.shape
    H4 = zxf_ref.shape[-1]
    H = H4 // 4
    cdtype = x_ref.dtype               # matmul / storage dtype (f32 or bf16)

    # ---- hoisted, throughput-bound matmuls (off the recurrent critical path) ----
    # linear_input + relu as ONE (n*B, D) @ (D, H) matmul.
    z = jnp.maximum(
        jnp.dot(x_ref[...], w_in_ref[...], preferred_element_type=jnp.float32)
        + b_in_ref[...], 0.0)
    zc = z.astype(cdtype)

    # x-side gate projections (+ bias), gate order [i, f, o, g], written straight
    # into VMEM scratch with a single unmasked bulk store per direction.
    zxf_ref[...] = (jnp.dot(zc, wx4_f_ref[...], preferred_element_type=jnp.float32)
                    + b4_f_ref[...]).astype(zxf_ref.dtype)
    zxb_ref[...] = (jnp.dot(zc, wx4_b_ref[...], preferred_element_type=jnp.float32)
                    + b4_b_ref[...]).astype(zxb_ref.dtype)

    def cell(pre, h, c, pooled, m_t):
        # gate order [i, f, o, g]: one sigmoid push on (B,3H), one tanh on (B,H).
        sig = jax.nn.sigmoid(pre[:, :3 * H])
        g_g = jnp.tanh(pre[:, 3 * H:])
        c_new = sig[:, H:2 * H] * c + sig[:, :H] * g_g
        h_new = sig[:, 2 * H:3 * H] * jnp.tanh(c_new)
        sel = m_t > 0.0                   # (B, 1): mask is {0, 1} before 1/len fold
        h = jnp.where(sel, h_new, h)      # padded steps carry previous state
        c = jnp.where(sel, c_new, c)
        return h, c, pooled + h * m_t     # mask already folded with 1/length

    zeros = jnp.zeros((B, H), jnp.float32)

    def step(t, carry):
        h_f, c_f, p_f, h_b, c_b, p_b = carry
        tb = n - 1 - t
        # ONE fused (B, 2H) @ (2H, 8H) block-diagonal matmul for both directions.
        h_fb = jnp.concatenate([h_f, h_b], axis=-1).astype(cdtype)
        hdot = jnp.dot(h_fb, wh_bd_ref[...], preferred_element_type=jnp.float32)
        pre_f = zxf_ref[pl.ds(pl.multiple_of(t * B, B), B), :] + hdot[:, :H4]
        pre_b = zxb_ref[pl.ds(pl.multiple_of(tb * B, B), B), :] + hdot[:, H4:]
        h_f, c_f, p_f = cell(pre_f, h_f, c_f, p_f, m_ref[t])
        h_b, c_b, p_b = cell(pre_b, h_b, c_b, p_b, m_ref[tb])
        return h_f, c_f, p_f, h_b, c_b, p_b

    # TODO(synk): on v7x, run the two directions on the two TensorCores
    # (direction grid axis + CORE_PARALLEL) instead of interleaving them here.
    unroll = True if n <= 16 else 4        # bound code size / vreg pressure at big n
    _, _, mean_f, _, _, mean_b = lax.fori_loop(
        0, n, step, (zeros, zeros, zeros, zeros, zeros, zeros), unroll=unroll)

    # fc_hidden on concat([fwd, bwd]) realized as two matmuls (avoids lane concat)
    hid = jnp.maximum(
        jnp.dot(mean_f.astype(cdtype), w_fc_f_ref[...], preferred_element_type=jnp.float32)
        + jnp.dot(mean_b.astype(cdtype), w_fc_b_ref[...], preferred_element_type=jnp.float32)
        + b_fc_ref[...], 0.0)
    # logits projection padded to 128 lanes -> unmasked, lane-dense store
    out_ref[...] = (jnp.dot(hid.astype(cdtype), w_out_ref[...],
                            preferred_element_type=jnp.float32) + b_out_ref[...])


def lstm_model_forward(x_idx, mask, lengths, p, compute_dtype=jnp.float32):
    """Glue: embedding gather + weight restacking, then one pallas_call."""
    x_vecs = p["word_mat"][x_idx].astype(jnp.float32)            # (B, n, D) gather in JAX
    B, n, D = x_vecs.shape
    H = p["w_in"].shape[1]
    H4 = 4 * H
    L = p["w_out"].shape[1]
    Lp = 128                                                     # lane-dense logits pad
    cdtype = jnp.dtype(compute_dtype)

    # time-major + flattened so linear_input / x-gate projections are single matmuls
    x_flat = jnp.transpose(x_vecs, (1, 0, 2)).reshape(n * B, D).astype(cdtype)

    # mask folded with 1/length (guard lengths==0; reference would produce nan),
    # time-major (n, B, 1).  Kernel carry-through predicate is `m > 0`, which
    # assumes a strictly {0,1} mask before the fold.
    inv_len = 1.0 / jnp.maximum(lengths, 1).astype(jnp.float32)
    m_tm = jnp.transpose(mask.astype(jnp.float32) * inv_len[:, None], (1, 0))[..., None]

    # restack per-gate LSTM weights (4, in, H) [i,f,g,o] -> (in, 4H) [i,f,o,g]
    perm = jnp.array([0, 1, 3, 2])
    def stack_gates(w):
        return jnp.transpose(w[perm], (1, 0, 2)).reshape(w.shape[1], H4)
    wx4_f, wx4_b = stack_gates(p["wx_f"]), stack_gates(p["wx_b"])
    b4_f = p["b_f"][perm].reshape(1, H4)
    b4_b = p["b_b"][perm].reshape(1, H4)
    # block-diagonal recurrent weight: [h_f | h_b] @ wh_bd -> [pre_f | pre_b]
    wh_bd = jnp.zeros((2 * H, 8 * H), jnp.float32)
    wh_bd = wh_bd.at[:H, :H4].set(stack_gates(p["wh_f"]))
    wh_bd = wh_bd.at[H:, H4:].set(stack_gates(p["wh_b"]))

    # pad the tiny (H, L) logits projection to a full 128-lane tile
    w_out_p = jnp.zeros((H, Lp), jnp.float32).at[:, :L].set(p["w_out"])
    b_out_p = jnp.zeros((1, Lp), jnp.float32).at[:, :L].set(p["b_out"])

    inputs = (x_flat, m_tm,
              p["w_in"].astype(cdtype), p["b_in"],
              wx4_f.astype(cdtype), wx4_b.astype(cdtype), b4_f, b4_b,
              wh_bd.astype(cdtype),
              p["w_fc_f"].astype(cdtype), p["w_fc_b"].astype(cdtype), p["b_fc"],
              w_out_p.astype(cdtype), b_out_p)

    in_specs = [pl.BlockSpec(a.shape, lambda i, nd=a.ndim: (0,) * nd) for a in inputs]

    flops = (2 * n * B * D * H                 # linear_input
             + 2 * 2 * n * B * H * H4          # hoisted x-projections (both dirs)
             + 2 * n * B * (2 * H) * (8 * H)   # fused recurrent matmul
             + 2 * B * (2 * H) * H             # fc_hidden
             + 2 * B * H * Lp)                 # fc_output
    input_bytes = sum(int(a.size) * jnp.dtype(a.dtype).itemsize for a in inputs)
    scratch_bytes = 2 * n * B * H4 * cdtype.itemsize
    cost = pl.CostEstimate(
        flops=flops,
        transcendentals=2 * n * B * 5 * H,
        bytes_accessed=input_bytes + B * Lp * 4)

    # explicit VMEM budget (matters on v7x: 64 MiB physical / 32 MiB default scoped)
    vmem_limit = int(min(100 * 2**20,
                         max(4 * 2**20, 2 * (input_bytes + scratch_bytes) + B * Lp * 4)))

    # TODO(synk): for long sequences, chunk the time axis into an 'arbitrary' grid
    # dimension with h/c/pooled carried in persistent VMEM scratch so x/zx blocks
    # are double-buffered (pipelined) against the previous chunk's recurrence.
    out = pl.pallas_call(
        _lstm_model_kernel,
        out_shape=jax.ShapeDtypeStruct((B, Lp), jnp.float32),
        grid=(1,),
        in_specs=in_specs,
        out_specs=pl.BlockSpec((B, Lp), lambda i: (0, 0)),
        scratch_shapes=[pltpu.VMEM((n * B, H4), cdtype),
                        pltpu.VMEM((n * B, H4), cdtype)],
        compiler_params=pltpu.CompilerParams(
            dimension_semantics=("arbitrary",),
            vmem_limit_bytes=vmem_limit),
        cost_estimate=cost,
    )(*inputs)
    return out[:, :L]


def lstm_model_reference(x_idx, mask, lengths, p):
    """Pure-JAX mirror of the PyTorch forward (eval mode) for verification."""
    x_vecs = p["word_mat"][x_idx].astype(jnp.float32)
    z = jax.nn.relu(jnp.einsum("bnd,dh->bnh", x_vecs, p["w_in"]) + p["b_in"][0])
    B, n, H = z.shape
    m = mask.astype(jnp.float32)

    def direction(order, wx, wh, b):
        h = jnp.zeros((B, H), jnp.float32)
        c = jnp.zeros((B, H), jnp.float32)
        pooled = jnp.zeros((B, H), jnp.float32)
        for t in order:
            z_t = z[:, t, :]
            m_t = m[:, t][:, None]
            pre = [z_t @ wx[g] + h @ wh[g] + b[g] for g in range(4)]
            i_g = jax.nn.sigmoid(pre[0])
            f_g = jax.nn.sigmoid(pre[1])
            g_g = jnp.tanh(pre[2])
            o_g = jax.nn.sigmoid(pre[3])
            c_new = f_g * c + i_g * g_g
            h_new = o_g * jnp.tanh(c_new)
            h = m_t * h_new + (1.0 - m_t) * h
            c = m_t * c_new + (1.0 - m_t) * c
            pooled = pooled + h * m_t
        return pooled

    invlen = (1.0 / lengths.astype(jnp.float32))[:, None]
    mean_f = direction(range(n), p["wx_f"], p["wh_f"], p["b_f"]) * invlen
    mean_b = direction(range(n - 1, -1, -1), p["wx_b"], p["wh_b"], p["b_b"]) * invlen
    hid = jax.nn.relu(mean_f @ p["w_fc_f"] + mean_b @ p["w_fc_b"] + p["b_fc"][0])
    return hid @ p["w_out"] + p["b_out"][0]


def init_params(key, vocab_size, word_vec_size, hidden_size, num_labels):
    ks = jax.random.split(key, 14)
    def rn(k, shape, scale=0.1):
        return (scale * jax.random.normal(k, shape)).astype(jnp.float32)
    D, H = word_vec_size, hidden_size
    return dict(
        word_mat=rn(ks[0], (vocab_size, D), 1.0),
        w_in=rn(ks[1], (D, H)), b_in=rn(ks[2], (1, H)),
        wx_f=rn(ks[3], (4, H, H)), wh_f=rn(ks[4], (4, H, H)), b_f=rn(ks[5], (4, 1, H)),
        wx_b=rn(ks[6], (4, H, H)), wh_b=rn(ks[7], (4, H, H)), b_b=rn(ks[8], (4, 1, H)),
        w_fc_f=rn(ks[9], (H, H)), w_fc_b=rn(ks[10], (H, H)), b_fc=rn(ks[11], (1, H)),
        w_out=rn(ks[12], (H, num_labels)), b_out=rn(ks[13], (1, num_labels)),
    )


if __name__ == "__main__":
    B, n = 2, 8
    vocab_size, word_vec_size, hidden_size, num_labels = 50, 16, 32, 2

    key = jax.random.PRNGKey(0)
    k_params, k_idx = jax.random.split(key)
    params = init_params(k_params, vocab_size, word_vec_size, hidden_size, num_labels)

    # deterministic batch: indices >= 2 are "real" words, pad index is 1
    x_idx = jax.random.randint(k_idx, (B, n), 2, vocab_size)
    mask = jnp.array([[1, 1, 1, 1, 1, 1, 1, 1],
                      [1, 1, 1, 1, 1, 0, 0, 0]], dtype=jnp.int32)
    x_idx = jnp.where(mask == 1, x_idx, 1)
    lengths = mask.sum(axis=1)

    ref = lstm_model_reference(x_idx, mask, lengths, params)

    # exact-math path (f32 storage + matmuls) -> tight tolerance
    logits = jax.block_until_ready(lstm_model_forward(x_idx, mask, lengths, params))
    assert logits.shape == (B, num_labels)
    assert jnp.allclose(logits, ref, atol=1e-4, rtol=1e-4), (logits, ref)

    # bf16 storage/matmul path (f32 accumulation + f32 gate math) -> looser tolerance
    logits_bf16 = jax.block_until_ready(
        lstm_model_forward(x_idx, mask, lengths, params, compute_dtype=jnp.bfloat16))
    assert jnp.allclose(logits_bf16, ref, atol=1e-1, rtol=1e-1), (logits_bf16, ref)

    print("KERNEL_OK")
</pallas_src>

<mosaic_0001>
module attributes {stable_mosaic.version = 11 : i64} {
  func.func @_lstm_model_kernel(%arg0: i32, %arg1: memref<16x16xf32, #tpu.memory_space<vmem>>, %arg2: memref<8x2x1xf32, #tpu.memory_space<vmem>>, %arg3: memref<16x32xf32, #tpu.memory_space<vmem>>, %arg4: memref<1x32xf32, #tpu.memory_space<vmem>>, %arg5: memref<32x128xf32, #tpu.memory_space<vmem>>, %arg6: memref<32x128xf32, #tpu.memory_space<vmem>>, %arg7: memref<1x128xf32, #tpu.memory_space<vmem>>, %arg8: memref<1x128xf32, #tpu.memory_space<vmem>>, %arg9: memref<64x256xf32, #tpu.memory_space<vmem>>, %arg10: memref<32x32xf32, #tpu.memory_space<vmem>>, %arg11: memref<32x32xf32, #tpu.memory_space<vmem>>, %arg12: memref<1x32xf32, #tpu.memory_space<vmem>>, %arg13: memref<32x128xf32, #tpu.memory_space<vmem>>, %arg14: memref<1x128xf32, #tpu.memory_space<vmem>>, %arg15: memref<2x128xf32, #tpu.memory_space<vmem>>, %arg16: memref<16x128xf32, #tpu.memory_space<vmem>>, %arg17: memref<16x128xf32, #tpu.memory_space<vmem>>) attributes {dimension_semantics = [#tpu.dimension_semantics<arbitrary>], iteration_bounds = array<i64: 1>, scalar_prefetch = 0 : i64, scratch_operands = 2 : i64, tpu.core_type = #tpu.core_type<tc>, window_params = [{pipeline_mode = #tpu.pipeline_mode<synchronous>, transform_indices = @transform_0, window_bounds = array<i64: 16, 16>}, {pipeline_mode = #tpu.pipeline_mode<synchronous>, transform_indices = @transform_1, window_bounds = array<i64: 8, 2, 1>}, {pipeline_mode = #tpu.pipeline_mode<synchronous>, transform_indices = @transform_2, window_bounds = array<i64: 16, 32>}, {pipeline_mode = #tpu.pipeline_mode<synchronous>, transform_indices = @transform_3, window_bounds = array<i64: 1, 32>}, {pipeline_mode = #tpu.pipeline_mode<synchronous>, transform_indices = @transform_4, window_bounds = array<i64: 32, 128>}, {pipeline_mode = #tpu.pipeline_mode<synchronous>, transform_indices = @transform_5, window_bounds = array<i64: 32, 128>}, {pipeline_mode = #tpu.pipeline_mode<synchronous>, transform_indices = @transform_6, window_bounds = array<i64: 1, 128>}, {pipeline_mode = #tpu.pipeline_mode<synchronous>, transform_indices = @transform_7, window_bounds = array<i64: 1, 128>}, {pipeline_mode = #tpu.pipeline_mode<synchronous>, transform_indices = @transform_8, window_bounds = array<i64: 64, 256>}, {pipeline_mode = #tpu.pipeline_mode<synchronous>, transform_indices = @transform_9, window_bounds = array<i64: 32, 32>}, {pipeline_mode = #tpu.pipeline_mode<synchronous>, transform_indices = @transform_10, window_bounds = array<i64: 32, 32>}, {pipeline_mode = #tpu.pipeline_mode<synchronous>, transform_indices = @transform_11, window_bounds = array<i64: 1, 32>}, {pipeline_mode = #tpu.pipeline_mode<synchronous>, transform_indices = @transform_12, window_bounds = array<i64: 32, 128>}, {pipeline_mode = #tpu.pipeline_mode<synchronous>, transform_indices = @transform_13, window_bounds = array<i64: 1, 128>}, {pipeline_mode = #tpu.pipeline_mode<synchronous>, transform_indices = @transform_14, window_bounds = array<i64: 2, 128>}]} {
    %c0 = arith.constant 0 : index
    %c0_0 = arith.constant 0 : index
    %0 = vector.load %arg1[%c0, %c0_0] : memref<16x16xf32, #tpu.memory_space<vmem>>, vector<16x16xf32>
    %c0_1 = arith.constant 0 : index
    %c0_2 = arith.constant 0 : index
    %1 = vector.load %arg3[%c0_1, %c0_2] : memref<16x32xf32, #tpu.memory_space<vmem>>, vector<16x32xf32>
    %cst = arith.constant dense<0.000000e+00> : vector<16x32xf32>
    %2 = tpu.matmul %0, %1, %cst {dimension_numbers = #tpu.dot_dimension_numbers<[1], [0], [0], [1], [0, 0, 1, 1], [], []>} : vector<16x16xf32>, vector<16x32xf32>, vector<16x32xf32> -> vector<16x32xf32>
    %c0_3 = arith.constant 0 : index
    %c0_4 = arith.constant 0 : index
    %3 = vector.load %arg4[%c0_3, %c0_4] : memref<1x32xf32, #tpu.memory_space<vmem>>, vector<1x32xf32>
    %4 = vector.broadcast %3 : vector<1x32xf32> to vector<16x32xf32>
    %5 = arith.addf %2, %4 : vector<16x32xf32>
    %cst_5 = arith.constant 0.000000e+00 : f32
    %6 = vector.broadcast %cst_5 : f32 to vector<16x32xf32>
    %7 = arith.maximumf %5, %6 : vector<16x32xf32>
    %c0_6 = arith.constant 0 : index
    %c0_7 = arith.constant 0 : index
    %8 = vector.load %arg5[%c0_6, %c0_7] : memref<32x128xf32, #tpu.memory_space<vmem>>, vector<32x128xf32>
    %cst_8 = arith.constant dense<0.000000e+00> : vector<16x128xf32>
    %9 = tpu.matmul %7, %8, %cst_8 {dimension_numbers = #tpu.dot_dimension_numbers<[1], [0], [0], [1], [0, 0, 1, 1], [], []>} : vector<16x32xf32>, vector<32x128xf32>, vector<16x128xf32> -> vector<16x128xf32>
    %c0_9 = arith.constant 0 : index
    %c0_10 = arith.constant 0 : index
    %10 = vector.load %arg7[%c0_9, %c0_10] : memref<1x128xf32, #tpu.memory_space<vmem>>, vector<1x128xf32>
    %11 = vector.broadcast %10 : vector<1x128xf32> to vector<16x128xf32>
    %12 = arith.addf %9, %11 : vector<16x128xf32>
    %c0_11 = arith.constant 0 : index
    %c0_12 = arith.constant 0 : index
    %13 = vector.load %arg16[%c0_11, %c0_12] : memref<16x128xf32, #tpu.memory_space<vmem>>, vector<16x128xf32>
    tpu.vector_store %arg16[%c0_11, %c0_12], %12 {strides = array<i32>} : memref<16x128xf32, #tpu.memory_space<vmem>>, vector<16x128xf32>,
    %c0_13 = arith.constant 0 : index
    %c0_14 = arith.constant 0 : index
    %14 = vector.load %arg6[%c0_13, %c0_14] : memref<32x128xf32, #tpu.memory_space<vmem>>, vector<32x128xf32>
    %cst_15 = arith.constant dense<0.000000e+00> : vector<16x128xf32>
    %15 = tpu.matmul %7, %14, %cst_15 {dimension_numbers = #tpu.dot_dimension_numbers<[1], [0], [0], [1], [0, 0, 1, 1], [], []>} : vector<16x32xf32>, vector<32x128xf32>, vector<16x128xf32> -> vector<16x128xf32>
    %c0_16 = arith.constant 0 : index
    %c0_17 = arith.constant 0 : index
    %16 = vector.load %arg8[%c0_16, %c0_17] : memref<1x128xf32, #tpu.memory_space<vmem>>, vector<1x128xf32>
    %17 = vector.broadcast %16 : vector<1x128xf32> to vector<16x128xf32>
    %18 = arith.addf %15, %17 : vector<16x128xf32>
    %c0_18 = arith.constant 0 : index
    %c0_19 = arith.constant 0 : index
    %19 = vector.load %arg17[%c0_18, %c0_19] : memref<16x128xf32, #tpu.memory_space<vmem>>, vector<16x128xf32>
    tpu.vector_store %arg17[%c0_18, %c0_19], %18 {strides = array<i32>} : memref<16x128xf32, #tpu.memory_space<vmem>>, vector<16x128xf32>,
    %cst_20 = arith.constant 0.000000e+00 : f32
    %20 = vector.broadcast %cst_20 : f32 to vector<2x32xf32>
    %c0_i32 = arith.constant 0 : i32
    %c7_i32 = arith.constant 7 : i32
    %21 = arith.subi %c7_i32, %c0_i32 : i32
    %22 = tpu.concatenate %20, %20 in 1 : vector<2x32xf32>, vector<2x32xf32> -> vector<2x64xf32>
    %c0_21 = arith.constant 0 : index
    %c0_22 = arith.constant 0 : index
    %23 = vector.load %arg9[%c0_21, %c0_22] : memref<64x256xf32, #tpu.memory_space<vmem>>, vector<64x256xf32>
    %cst_23 = arith.constant dense<0.000000e+00> : vector<2x256xf32>
    %24 = tpu.matmul %22, %23, %cst_23 {dimension_numbers = #tpu.dot_dimension_numbers<[1], [0], [0], [1], [0, 0, 1, 1], [], []>} : vector<2x64xf32>, vector<64x256xf32>, vector<2x256xf32> -> vector<2x256xf32>
    %c2_i32 = arith.constant 2 : i32
    %25 = arith.muli %c0_i32, %c2_i32 : i32
    %26 = tpu.assume_multiple %25, 2 : i32
    %27 = arith.index_cast %26 : i32 to index
    %c0_24 = arith.constant 0 : index
    %28 = vector.load %arg16[%27, %c0_24] : memref<16x128xf32, #tpu.memory_space<vmem>>, vector<2x128xf32>
    %29 = vector.extract_strided_slice %24 {offsets = [0, 0], sizes = [2, 128], strides = [1, 1]} : vector<2x256xf32> to vector<2x128xf32>
    %30 = arith.addf %28, %29 : vector<2x128xf32>
    %c2_i32_25 = arith.constant 2 : i32
    %31 = arith.muli %21, %c2_i32_25 : i32
    %32 = tpu.assume_multiple %31, 2 : i32
    %33 = arith.index_cast %32 : i32 to index
    %c0_26 = arith.constant 0 : index
    %34 = vector.load %arg17[%33, %c0_26] : memref<16x128xf32, #tpu.memory_space<vmem>>, vector<2x128xf32>
    %35 = vector.extract_strided_slice %24 {offsets = [0, 128], sizes = [2, 128], strides = [1, 1]} : vector<2x256xf32> to vector<2x128xf32>
    %36 = arith.addf %34, %35 : vector<2x128xf32>
    %37 = arith.index_cast %c0_i32 : i32 to index
    %c0_27 = arith.constant 0 : index
    %c0_28 = arith.constant 0 : index
    %38 = vector.load %arg2[%37, %c0_27, %c0_28] : memref<8x2x1xf32, #tpu.memory_space<vmem>>, vector<1x2x1xf32>
    %39 = vector.shape_cast %38 : vector<1x2x1xf32> to vector<2x1xf32>
    %40 = vector.extract_strided_slice %30 {offsets = [0, 0], sizes = [2, 96], strides = [1, 1]} : vector<2x128xf32> to vector<2x96xf32>
    %41 = arith.negf %40 : vector<2x96xf32>
    %42 = math.exp %41 : vector<2x96xf32>
    %cst_29 = arith.constant 1.000000e+00 : f32
    %43 = vector.broadcast %cst_29 : f32 to vector<2x96xf32>
    %44 = arith.addf %43, %42 : vector<2x96xf32>
    %45 = arith.divf %43, %44 : vector<2x96xf32>
    %46 = vector.extract_strided_slice %30 {offsets = [0, 96], sizes = [2, 32], strides = [1, 1]} : vector<2x128xf32> to vector<2x32xf32>
    %47 = math.tanh %46 : vector<2x32xf32>
    %48 = vector.extract_strided_slice %45 {offsets = [0, 32], sizes = [2, 32], strides = [1, 1]} : vector<2x96xf32> to vector<2x32xf32>
    %49 = arith.mulf %48, %20 : vector<2x32xf32>
    %50 = vector.extract_strided_slice %45 {offsets = [0, 0], sizes = [2, 32], strides = [1, 1]} : vector<2x96xf32> to vector<2x32xf32>
    %51 = arith.mulf %50, %47 : vector<2x32xf32>
    %52 = arith.addf %49, %51 : vector<2x32xf32>
    %53 = vector.extract_strided_slice %45 {offsets = [0, 64], sizes = [2, 32], strides = [1, 1]} : vector<2x96xf32> to vector<2x32xf32>
    %54 = math.tanh %52 : vector<2x32xf32>
    %55 = arith.mulf %53, %54 : vector<2x32xf32>
    %cst_30 = arith.constant 0.000000e+00 : f32
    %56 = vector.broadcast %cst_30 : f32 to vector<2x1xf32>
    %57 = arith.cmpf ogt, %39, %56 : vector<2x1xf32>
    %58 = vector.shape_cast %57 : vector<2x1xi1> to vector<2x1xi1>
    %59 = vector.broadcast %58 : vector<2x1xi1> to vector<2x32xi1>
    %60 = arith.select %59, %55, %20 : vector<2x32xi1>, vector<2x32xf32>
    %61 = vector.shape_cast %57 : vector<2x1xi1> to vector<2x1xi1>
    %62 = vector.broadcast %61 : vector<2x1xi1> to vector<2x32xi1>
    %63 = arith.select %62, %52, %20 : vector<2x32xi1>, vector<2x32xf32>
    %64 = vector.broadcast %39 : vector<2x1xf32> to vector<2x32xf32>
    %65 = arith.mulf %60, %64 : vector<2x32xf32>
    %66 = arith.addf %20, %65 : vector<2x32xf32>
    %67 = arith.index_cast %21 : i32 to index
    %c0_31 = arith.constant 0 : index
    %c0_32 = arith.constant 0 : index
    %68 = vector.load %arg2[%67, %c0_31, %c0_32] : memref<8x2x1xf32, #tpu.memory_space<vmem>>, vector<1x2x1xf32>
    %69 = vector.shape_cast %68 : vector<1x2x1xf32> to vector<2x1xf32>
    %70 = vector.extract_strided_slice %36 {offsets = [0, 0], sizes = [2, 96], strides = [1, 1]} : vector<2x128xf32> to vector<2x96xf32>
    %71 = arith.negf %70 : vector<2x96xf32>
    %72 = math.exp %71 : vector<2x96xf32>
    %cst_33 = arith.constant 1.000000e+00 : f32
    %73 = vector.broadcast %cst_33 : f32 to vector<2x96xf32>
    %74 = arith.addf %73, %72 : vector<2x96xf32>
    %75 = arith.divf %73, %74 : vector<2x96xf32>
    %76 = vector.extract_strided_slice %36 {offsets = [0, 96], sizes = [2, 32], strides = [1, 1]} : vector<2x128xf32> to vector<2x32xf32>
    %77 = math.tanh %76 : vector<2x32xf32>
    %78 = vector.extract_strided_slice %75 {offsets = [0, 32], sizes = [2, 32], strides = [1, 1]} : vector<2x96xf32> to vector<2x32xf32>
    %79 = arith.mulf %78, %20 : vector<2x32xf32>
    %80 = vector.extract_strided_slice %75 {offsets = [0, 0], sizes = [2, 32], strides = [1, 1]} : vector<2x96xf32> to vector<2x32xf32>
    %81 = arith.mulf %80, %77 : vector<2x32xf32>
    %82 = arith.addf %79, %81 : vector<2x32xf32>
    %83 = vector.extract_strided_slice %75 {offsets = [0, 64], sizes = [2, 32], strides = [1, 1]} : vector<2x96xf32> to vector<2x32xf32>
    %84 = math.tanh %82 : vector<2x32xf32>
    %85 = arith.mulf %83, %84 : vector<2x32xf32>
    %cst_34 = arith.constant 0.000000e+00 : f32
    %86 = vector.broadcast %cst_34 : f32 to vector<2x1xf32>
    %87 = arith.cmpf ogt, %69, %86 : vector<2x1xf32>
    %88 = vector.shape_cast %87 : vector<2x1xi1> to vector<2x1xi1>
    %89 = vector.broadcast %88 : vector<2x1xi1> to vector<2x32xi1>
    %90 = arith.select %89, %85, %20 : vector<2x32xi1>, vector<2x32xf32>
    %91 = vector.shape_cast %87 : vector<2x1xi1> to vector<2x1xi1>
    %92 = vector.broadcast %91 : vector<2x1xi1> to vector<2x32xi1>
    %93 = arith.select %92, %82, %20 : vector<2x32xi1>, vector<2x32xf32>
    %94 = vector.broadcast %69 : vector<2x1xf32> to vector<2x32xf32>
    %95 = arith.mulf %90, %94 : vector<2x32xf32>
    %96 = arith.addf %20, %95 : vector<2x32xf32>
    %c1_i32 = arith.constant 1 : i32
    %c7_i32_35 = arith.constant 7 : i32
    %97 = arith.subi %c7_i32_35, %c1_i32 : i32
    %98 = tpu.concatenate %60, %90 in 1 : vector<2x32xf32>, vector<2x32xf32> -> vector<2x64xf32>
    %c0_36 = arith.constant 0 : index
    %c0_37 = arith.constant 0 : index
    %99 = vector.load %arg9[%c0_36, %c0_37] : memref<64x256xf32, #tpu.memory_space<vmem>>, vector<64x256xf32>
    %cst_38 = arith.constant dense<0.000000e+00> : vector<2x256xf32>
    %100 = tpu.matmul %98, %99, %cst_38 {dimension_numbers = #tpu.dot_dimension_numbers<[1], [0], [0], [1], [0, 0, 1, 1], [], []>} : vector<2x64xf32>, vector<64x256xf32>, vector<2x256xf32> -> vector<2x256xf32>
    %c2_i32_39 = arith.constant 2 : i32
    %101 = arith.muli %c1_i32, %c2_i32_39 : i32
    %102 = tpu.assume_multiple %101, 2 : i32
    %103 = arith.index_cast %102 : i32 to index
    %c0_40 = arith.constant 0 : index
    %104 = vector.load %arg16[%103, %c0_40] : memref<16x128xf32, #tpu.memory_space<vmem>>, vector<2x128xf32>
    %105 = vector.extract_strided_slice %100 {offsets = [0, 0], sizes = [2, 128], strides = [1, 1]} : vector<2x256xf32> to vector<2x128xf32>
    %106 = arith.addf %104, %105 : vector<2x128xf32>
    %c2_i32_41 = arith.constant 2 : i32
    %107 = arith.muli %97, %c2_i32_41 : i32
    %108 = tpu.assume_multiple %107, 2 : i32
    %109 = arith.index_cast %108 : i32 to index
    %c0_42 = arith.constant 0 : index
    %110 = vector.load %arg17[%109, %c0_42] : memref<16x128xf32, #tpu.memory_space<vmem>>, vector<2x128xf32>
    %111 = vector.extract_strided_slice %100 {offsets = [0, 128], sizes = [2, 128], strides = [1, 1]} : vector<2x256xf32> to vector<2x128xf32>
    %112 = arith.addf %110, %111 : vector<2x128xf32>
    %113 = arith.index_cast %c1_i32 : i32 to index
    %c0_43 = arith.constant 0 : index
    %c0_44 = arith.constant 0 : index
    %114 = vector.load %arg2[%113, %c0_43, %c0_44] : memref<8x2x1xf32, #tpu.memory_space<vmem>>, vector<1x2x1xf32>
    %115 = vector.shape_cast %114 : vector<1x2x1xf32> to vector<2x1xf32>
    %116 = vector.extract_strided_slice %106 {offsets = [0, 0], sizes = [2, 96], strides = [1, 1]} : vector<2x128xf32> to vector<2x96xf32>
    %117 = arith.negf %116 : vector<2x96xf32>
    %118 = math.exp %117 : vector<2x96xf32>
    %cst_45 = arith.constant 1.000000e+00 : f32
    %119 = vector.broadcast %cst_45 : f32 to vector<2x96xf32>
    %120 = arith.addf %119, %118 : vector<2x96xf32>
    %121 = arith.divf %119, %120 : vector<2x96xf32>
    %122 = vector.extract_strided_slice %106 {offsets = [0, 96], sizes = [2, 32], strides = [1, 1]} : vector<2x128xf32> to vector<2x32xf32>
    %123 = math.tanh %122 : vector<2x32xf32>
    %124 = vector.extract_strided_slice %121 {offsets = [0, 32], sizes = [2, 32], strides = [1, 1]} : vector<2x96xf32> to vector<2x32xf32>
    %125 = arith.mulf %124, %63 : vector<2x32xf32>
    %126 = vector.extract_strided_slice %121 {offsets = [0, 0], sizes = [2, 32], strides = [1, 1]} : vector<2x96xf32> to vector<2x32xf32>
    %127 = arith.mulf %126, %123 : vector<2x32xf32>
    %128 = arith.addf %125, %127 : vector<2x32xf32>
    %129 = vector.extract_strided_slice %121 {offsets = [0, 64], sizes = [2, 32], strides = [1, 1]} : vector<2x96xf32> to vector<2x32xf32>
    %130 = math.tanh %128 : vector<2x32xf32>
    %131 = arith.mulf %129, %130 : vector<2x32xf32>
    %cst_46 = arith.constant 0.000000e+00 : f32
    %132 = vector.broadcast %cst_46 : f32 to vector<2x1xf32>
    %133 = arith.cmpf ogt, %115, %132 : vector<2x1xf32>
    %134 = vector.shape_cast %133 : vector<2x1xi1> to vector<2x1xi1>
    %135 = vector.broadcast %134 : vector<2x1xi1> to vector<2x32xi1>
    %136 = arith.select %135, %131, %60 : vector<2x32xi1>, vector<2x32xf32>
    %137 = vector.shape_cast %133 : vector<2x1xi1> to vector<2x1xi1>
    %138 = vector.broadcast %137 : vector<2x1xi1> to vector<2x32xi1>
    %139 = arith.select %138, %128, %63 : vector<2x32xi1>, vector<2x32xf32>
    %140 = vector.broadcast %115 : vector<2x1xf32> to vector<2x32xf32>
    %141 = arith.mulf %136, %140 : vector<2x32xf32>
    %142 = arith.addf %66, %141 : vector<2x32xf32>
    %143 = arith.index_cast %97 : i32 to index
    %c0_47 = arith.constant 0 : index
    %c0_48 = arith.constant 0 : index
    %144 = vector.load %arg2[%143, %c0_47, %c0_48] : memref<8x2x1xf32, #tpu.memory_space<vmem>>, vector<1x2x1xf32>
    %145 = vector.shape_cast %144 : vector<1x2x1xf32> to vector<2x1xf32>
    %146 = vector.extract_strided_slice %112 {offsets = [0, 0], sizes = [2, 96], strides = [1, 1]} : vector<2x128xf32> to vector<2x96xf32>
    %147 = arith.negf %146 : vector<2x96xf32>
    %148 = math.exp %147 : vector<2x96xf32>
    %cst_49 = arith.constant 1.000000e+00 : f32
    %149 = vector.broadcast %cst_49 : f32 to vector<2x96xf32>
    %150 = arith.addf %149, %148 : vector<2x96xf32>
    %151 = arith.divf %149, %150 : vector<2x96xf32>
    %152 = vector.extract_strided_slice %112 {offsets = [0, 96], sizes = [2, 32], strides = [1, 1]} : vector<2x128xf32> to vector<2x32xf32>
    %153 = math.tanh %152 : vector<2x32xf32>
    %154 = vector.extract_strided_slice %151 {offsets = [0, 32], sizes = [2, 32], strides = [1, 1]} : vector<2x96xf32> to vector<2x32xf32>
    %155 = arith.mulf %154, %93 : vector<2x32xf32>
    %156 = vector.extract_strided_slice %151 {offsets = [0, 0], sizes = [2, 32], strides = [1, 1]} : vector<2x96xf32> to vector<2x32xf32>
    %157 = arith.mulf %156, %153 : vector<2x32xf32>
    %158 = arith.addf %155, %157 : vector<2x32xf32>
    %159 = vector.extract_strided_slice %151 {offsets = [0, 64], sizes = [2, 32], strides = [1, 1]} : vector<2x96xf32> to vector<2x32xf32>
    %160 = math.tanh %158 : vector<2x32xf32>
    %161 = arith.mulf %159, %160 : vector<2x32xf32>
    %cst_50 = arith.constant 0.000000e+00 : f32
    %162 = vector.broadcast %cst_50 : f32 to vector<2x1xf32>
    %163 = arith.cmpf ogt, %145, %162 : vector<2x1xf32>
    %164 = vector.shape_cast %163 : vector<2x1xi1> to vector<2x1xi1>
    %165 = vector.broadcast %164 : vector<2x1xi1> to vector<2x32xi1>
    %166 = arith.select %165, %161, %90 : vector<2x32xi1>, vector<2x32xf32>
    %167 = vector.shape_cast %163 : vector<2x1xi1> to vector<2x1xi1>
    %168 = vector.broadcast %167 : vector<2x1xi1> to vector<2x32xi1>
    %169 = arith.select %168, %158, %93 : vector<2x32xi1>, vector<2x32xf32>
    %170 = vector.broadcast %145 : vector<2x1xf32> to vector<2x32xf32>
    %171 = arith.mulf %166, %170 : vector<2x32xf32>
    %172 = arith.addf %96, %171 : vector<2x32xf32>
    %c2_i32_51 = arith.constant 2 : i32
    %c7_i32_52 = arith.constant 7 : i32
    %173 = arith.subi %c7_i32_52, %c2_i32_51 : i32
    %174 = tpu.concatenate %136, %166 in 1 : vector<2x32xf32>, vector<2x32xf32> -> vector<2x64xf32>
    %c0_53 = arith.constant 0 : index
    %c0_54 = arith.constant 0 : index
    %175 = vector.load %arg9[%c0_53, %c0_54] : memref<64x256xf32, #tpu.memory_space<vmem>>, vector<64x256xf32>
    %cst_55 = arith.constant dense<0.000000e+00> : vector<2x256xf32>
    %176 = tpu.matmul %174, %175, %cst_55 {dimension_numbers = #tpu.dot_dimension_numbers<[1], [0], [0], [1], [0, 0, 1, 1], [], []>} : vector<2x64xf32>, vector<64x256xf32>, vector<2x256xf32> -> vector<2x256xf32>
    %c2_i32_56 = arith.constant 2 : i32
    %177 = arith.muli %c2_i32_51, %c2_i32_56 : i32
    %178 = tpu.assume_multiple %177, 2 : i32
    %179 = arith.index_cast %178 : i32 to index
    %c0_57 = arith.constant 0 : index
    %180 = vector.load %arg16[%179, %c0_57] : memref<16x128xf32, #tpu.memory_space<vmem>>, vector<2x128xf32>
    %181 = vector.extract_strided_slice %176 {offsets = [0, 0], sizes = [2, 128], strides = [1, 1]} : vector<2x256xf32> to vector<2x128xf32>
    %182 = arith.addf %180, %181 : vector<2x128xf32>
    %c2_i32_58 = arith.constant 2 : i32
    %183 = arith.muli %173, %c2_i32_58 : i32
    %184 = tpu.assume_multiple %183, 2 : i32
    %185 = arith.index_cast %184 : i32 to index
    %c0_59 = arith.constant 0 : index
    %186 = vector.load %arg17[%185, %c0_59] : memref<16x128xf32, #tpu.memory_space<vmem>>, vector<2x128xf32>
    %187 = vector.extract_strided_slice %176 {offsets = [0, 128], sizes = [2, 128], strides = [1, 1]} : vector<2x256xf32> to vector<2x128xf32>
    %188 = arith.addf %186, %187 : vector<2x128xf32>
    %189 = arith.index_cast %c2_i32_51 : i32 to index
    %c0_60 = arith.constant 0 : index
    %c0_61 = arith.constant 0 : index
    %190 = vector.load %arg2[%189, %c0_60, %c0_61] : memref<8x2x1xf32, #tpu.memory_space<vmem>>, vector<1x2x1xf32>
    %191 = vector.shape_cast %190 : vector<1x2x1xf32> to vector<2x1xf32>
    %192 = vector.extract_strided_slice %182 {offsets = [0, 0], sizes = [2, 96], strides = [1, 1]} : vector<2x128xf32> to vector<2x96xf32>
    %193 = arith.negf %192 : vector<2x96xf32>
    %194 = math.exp %193 : vector<2x96xf32>
    %cst_62 = arith.constant 1.000000e+00 : f32
    %195 = vector.broadcast %cst_62 : f32 to vector<2x96xf32>
    %196 = arith.addf %195, %194 : vector<2x96xf32>
    %197 = arith.divf %195, %196 : vector<2x96xf32>
    %198 = vector.extract_strided_slice %182 {offsets = [0, 96], sizes = [2, 32], strides = [1, 1]} : vector<2x128xf32> to vector<2x32xf32>
    %199 = math.tanh %198 : vector<2x32xf32>
    %200 = vector.extract_strided_slice %197 {offsets = [0, 32], sizes = [2, 32], strides = [1, 1]} : vector<2x96xf32> to vector<2x32xf32>
    %201 = arith.mulf %200, %139 : vector<2x32xf32>
    %202 = vector.extract_strided_slice %197 {offsets = [0, 0], sizes = [2, 32], strides = [1, 1]} : vector<2x96xf32> to vector<2x32xf32>
    %203 = arith.mulf %202, %199 : vector<2x32xf32>
    %204 = arith.addf %201, %203 : vector<2x32xf32>
    %205 = vector.extract_strided_slice %197 {offsets = [0, 64], sizes = [2, 32], strides = [1, 1]} : vector<2x96xf32> to vector<2x32xf32>
    %206 = math.tanh %204 : vector<2x32xf32>
    %207 = arith.mulf %205, %206 : vector<2x32xf32>
    %cst_63 = arith.constant 0.000000e+00 : f32
    %208 = vector.broadcast %cst_63 : f32 to vector<2x1xf32>
    %209 = arith.cmpf ogt, %191, %208 : vector<2x1xf32>
    %210 = vector.shape_cast %209 : vector<2x1xi1> to vector<2x1xi1>
    %211 = vector.broadcast %210 : vector<2x1xi1> to vector<2x32xi1>
    %212 = arith.select %211, %207, %136 : vector<2x32xi1>, vector<2x32xf32>
    %213 = vector.shape_cast %209 : vector<2x1xi1> to vector<2x1xi1>
    %214 = vector.broadcast %213 : vector<2x1xi1> to vector<2x32xi1>
    %215 = arith.select %214, %204, %139 : vector<2x32xi1>, vector<2x32xf32>
    %216 = vector.broadcast %191 : vector<2x1xf32> to vector<2x32xf32>
    %217 = arith.mulf %212, %216 : vector<2x32xf32>
    %218 = arith.addf %142, %217 : vector<2x32xf32>
    %219 = arith.index_cast %173 : i32 to index
    %c0_64 = arith.constant 0 : index
    %c0_65 = arith.constant 0 : index
    %220 = vector.load %arg2[%219, %c0_64, %c0_65] : memref<8x2x1xf32, #tpu.memory_space<vmem>>, vector<1x2x1xf32>
    %221 = vector.shape_cast %220 : vector<1x2x1xf32> to vector<2x1xf32>
    %222 = vector.extract_strided_slice %188 {offsets = [0, 0], sizes = [2, 96], strides = [1, 1]} : vector<2x128xf32> to vector<2x96xf32>
    %223 = arith.negf %222 : vector<2x96xf32>
    %224 = math.exp %223 : vector<2x96xf32>
    %cst_66 = arith.constant 1.000000e+00 : f32
    %225 = vector.broadcast %cst_66 : f32 to vector<2x96xf32>
    %226 = arith.addf %225, %224 : vector<2x96xf32>
    %227 = arith.divf %225, %226 : vector<2x96xf32>
    %228 = vector.extract_strided_slice %188 {offsets = [0, 96], sizes = [2, 32], strides = [1, 1]} : vector<2x128xf32> to vector<2x32xf32>
    %229 = math.tanh %228 : vector<2x32xf32>
    %230 = vector.extract_strided_slice %227 {offsets = [0, 32], sizes = [2, 32], strides = [1, 1]} : vector<2x96xf32> to vector<2x32xf32>
    %231 = arith.mulf %230, %169 : vector<2x32xf32>
    %232 = vector.extract_strided_slice %227 {offsets = [0, 0], sizes = [2, 32], strides = [1, 1]} : vector<2x96xf32> to vector<2x32xf32>
    %233 = arith.mulf %232, %229 : vector<2x32xf32>
    %234 = arith.addf %231, %233 : vector<2x32xf32>
    %235 = vector.extract_strided_slice %227 {offsets = [0, 64], sizes = [2, 32], strides = [1, 1]} : vector<2x96xf32> to vector<2x32xf32>
    %236 = math.tanh %234 : vector<2x32xf32>
    %237 = arith.mulf %235, %236 : vector<2x32xf32>
    %cst_67 = arith.constant 0.000000e+00 : f32
    %238 = vector.broadcast %cst_67 : f32 to vector<2x1xf32>
    %239 = arith.cmpf ogt, %221, %238 : vector<2x1xf32>
    %240 = vector.shape_cast %239 : vector<2x1xi1> to vector<2x1xi1>
    %241 = vector.broadcast %240 : vector<2x1xi1> to vector<2x32xi1>
    %242 = arith.select %241, %237, %166 : vector<2x32xi1>, vector<2x32xf32>
    %243 = vector.shape_cast %239 : vector<2x1xi1> to vector<2x1xi1>
    %244 = vector.broadcast %243 : vector<2x1xi1> to vector<2x32xi1>
    %245 = arith.select %244, %234, %169 : vector<2x32xi1>, vector<2x32xf32>
    %246 = vector.broadcast %221 : vector<2x1xf32> to vector<2x32xf32>
    %247 = arith.mulf %242, %246 : vector<2x32xf32>
    %248 = arith.addf %172, %247 : vector<2x32xf32>
    %c3_i32 = arith.constant 3 : i32
    %c7_i32_68 = arith.constant 7 : i32
    %249 = arith.subi %c7_i32_68, %c3_i32 : i32
    %250 = tpu.concatenate %212, %242 in 1 : vector<2x32xf32>, vector<2x32xf32> -> vector<2x64xf32>
    %c0_69 = arith.constant 0 : index
    %c0_70 = arith.constant 0 : index
    %251 = vector.load %arg9[%c0_69, %c0_70] : memref<64x256xf32, #tpu.memory_space<vmem>>, vector<64x256xf32>
    %cst_71 = arith.constant dense<0.000000e+00> : vector<2x256xf32>
    %252 = tpu.matmul %250, %251, %cst_71 {dimension_numbers = #tpu.dot_dimension_numbers<[1], [0], [0], [1], [0, 0, 1, 1], [], []>} : vector<2x64xf32>, vector<64x256xf32>, vector<2x256xf32> -> vector<2x256xf32>
    %c2_i32_72 = arith.constant 2 : i32
    %253 = arith.muli %c3_i32, %c2_i32_72 : i32
    %254 = tpu.assume_multiple %253, 2 : i32
    %255 = arith.index_cast %254 : i32 to index
    %c0_73 = arith.constant 0 : index
    %256 = vector.load %arg16[%255, %c0_73] : memref<16x128xf32, #tpu.memory_space<vmem>>, vector<2x128xf32>
    %257 = vector.extract_strided_slice %252 {offsets = [0, 0], sizes = [2, 128], strides = [1, 1]} : vector<2x256xf32> to vector<2x128xf32>
    %258 = arith.addf %256, %257 : vector<2x128xf32>
    %c2_i32_74 = arith.constant 2 : i32
    %259 = arith.muli %249, %c2_i32_74 : i32
    %260 = tpu.assume_multiple %259, 2 : i32
    %261 = arith.index_cast %260 : i32 to index
    %c0_75 = arith.constant 0 : index
    %262 = vector.load %arg17[%261, %c0_75] : memref<16x128xf32, #tpu.memory_space<vmem>>, vector<2x128xf32>
    %263 = vector.extract_strided_slice %252 {offsets = [0, 128], sizes = [2, 128], strides = [1, 1]} : vector<2x256xf32> to vector<2x128xf32>
    %264 = arith.addf %262, %263 : vector<2x128xf32>
    %265 = arith.index_cast %c3_i32 : i32 to index
    %c0_76 = arith.constant 0 : index
    %c0_77 = arith.constant 0 : index
    %266 = vector.load %arg2[%265, %c0_76, %c0_77] : memref<8x2x1xf32, #tpu.memory_space<vmem>>, vector<1x2x1xf32>
    %267 = vector.shape_cast %266 : vector<1x2x1xf32> to vector<2x1xf32>
    %268 = vector.extract_strided_slice %258 {offsets = [0, 0], sizes = [2, 96], strides = [1, 1]} : vector<2x128xf32> to vector<2x96xf32>
    %269 = arith.negf %268 : vector<2x96xf32>
    %270 = math.exp %269 : vector<2x96xf32>
    %cst_78 = arith.constant 1.000000e+00 : f32
    %271 = vector.broadcast %cst_78 : f32 to vector<2x96xf32>
    %272 = arith.addf %271, %270 : vector<2x96xf32>
    %273 = arith.divf %271, %272 : vector<2x96xf32>
    %274 = vector.extract_strided_slice %258 {offsets = [0, 96], sizes = [2, 32], strides = [1, 1]} : vector<2x128xf32> to vector<2x32xf32>
    %275 = math.tanh %274 : vector<2x32xf32>
    %276 = vector.extract_strided_slice %273 {offsets = [0, 32], sizes = [2, 32], strides = [1, 1]} : vector<2x96xf32> to vector<2x32xf32>
    %277 = arith.mulf %276, %215 : vector<2x32xf32>
    %278 = vector.extract_strided_slice %273 {offsets = [0, 0], sizes = [2, 32], strides = [1, 1]} : vector<2x96xf32> to vector<2x32xf32>
    %279 = arith.mulf %278, %275 : vector<2x32xf32>
    %280 = arith.addf %277, %279 : vector<2x32xf32>
    %281 = vector.extract_strided_slice %273 {offsets = [0, 64], sizes = [2, 32], strides = [1, 1]} : vector<2x96xf32> to vector<2x32xf32>
    %282 = math.tanh %280 : vector<2x32xf32>
    %283 = arith.mulf %281, %282 : vector<2x32xf32>
    %cst_79 = arith.constant 0.000000e+00 : f32
    %284 = vector.broadcast %cst_79 : f32 to vector<2x1xf32>
    %285 = arith.cmpf ogt, %267, %284 : vector<2x1xf32>
    %286 = vector.shape_cast %285 : vector<2x1xi1> to vector<2x1xi1>
    %287 = vector.broadcast %286 : vector<2x1xi1> to vector<2x32xi1>
    %288 = arith.select %287, %283, %212 : vector<2x32xi1>, vector<2x32xf32>
    %289 = vector.shape_cast %285 : vector<2x1xi1> to vector<2x1xi1>
    %290 = vector.broadcast %289 : vector<2x1xi1> to vector<2x32xi1>
    %291 = arith.select %290, %280, %215 : vector<2x32xi1>, vector<2x32xf32>
    %292 = vector.broadcast %267 : vector<2x1xf32> to vector<2x32xf32>
    %293 = arith.mulf %288, %292 : vector<2x32xf32>
    %294 = arith.addf %218, %293 : vector<2x32xf32>
    %295 = arith.index_cast %249 : i32 to index
    %c0_80 = arith.constant 0 : index
    %c0_81 = arith.constant 0 : index
    %296 = vector.load %arg2[%295, %c0_80, %c0_81] : memref<8x2x1xf32, #tpu.memory_space<vmem>>, vector<1x2x1xf32>
    %297 = vector.shape_cast %296 : vector<1x2x1xf32> to vector<2x1xf32>
    %298 = vector.extract_strided_slice %264 {offsets = [0, 0], sizes = [2, 96], strides = [1, 1]} : vector<2x128xf32> to vector<2x96xf32>
    %299 = arith.negf %298 : vector<2x96xf32>
    %300 = math.exp %299 : vector<2x96xf32>
    %cst_82 = arith.constant 1.000000e+00 : f32
    %301 = vector.broadcast %cst_82 : f32 to vector<2x96xf32>
    %302 = arith.addf %301, %300 : vector<2x96xf32>
    %303 = arith.divf %301, %302 : vector<2x96xf32>
    %304 = vector.extract_strided_slice %264 {offsets = [0, 96], sizes = [2, 32], strides = [1, 1]} : vector<2x128xf32> to vector<2x32xf32>
    %305 = math.tanh %304 : vector<2x32xf32>
    %306 = vector.extract_strided_slice %303 {offsets = [0, 32], sizes = [2, 32], strides = [1, 1]} : vector<2x96xf32> to vector<2x32xf32>
    %307 = arith.mulf %306, %245 : vector<2x32xf32>
    %308 = vector.extract_strided_slice %303 {offsets = [0, 0], sizes = [2, 32], strides = [1, 1]} : vector<2x96xf32> to vector<2x32xf32>
    %309 = arith.mulf %308, %305 : vector<2x32xf32>
    %310 = arith.addf %307, %309 : vector<2x32xf32>
    %311 = vector.extract_strided_slice %303 {offsets = [0, 64], sizes = [2, 32], strides = [1, 1]} : vector<2x96xf32> to vector<2x32xf32>
    %312 = math.tanh %310 : vector<2x32xf32>
    %313 = arith.mulf %311, %312 : vector<2x32xf32>
    %cst_83 = arith.constant 0.000000e+00 : f32
    %314 = vector.broadcast %cst_83 : f32 to vector<2x1xf32>
    %315 = arith.cmpf ogt, %297, %314 : vector<2x1xf32>
    %316 = vector.shape_cast %315 : vector<2x1xi1> to vector<2x1xi1>
    %317 = vector.broadcast %316 : vector<2x1xi1> to vector<2x32xi1>
    %318 = arith.select %317, %313, %242 : vector<2x32xi1>, vector<2x32xf32>
    %319 = vector.shape_cast %315 : vector<2x1xi1> to vector<2x1xi1>
    %320 = vector.broadcast %319 : vector<2x1xi1> to vector<2x32xi1>
    %321 = arith.select %320, %310, %245 : vector<2x32xi1>, vector<2x32xf32>
    %322 = vector.broadcast %297 : vector<2x1xf32> to vector<2x32xf32>
    %323 = arith.mulf %318, %322 : vector<2x32xf32>
    %324 = arith.addf %248, %323 : vector<2x32xf32>
    %c4_i32 = arith.constant 4 : i32
    %c7_i32_84 = arith.constant 7 : i32
    %325 = arith.subi %c7_i32_84, %c4_i32 : i32
    %326 = tpu.concatenate %288, %318 in 1 : vector<2x32xf32>, vector<2x32xf32> -> vector<2x64xf32>
    %c0_85 = arith.constant 0 : index
    %c0_86 = arith.constant 0 : index
    %327 = vector.load %arg9[%c0_85, %c0_86] : memref<64x256xf32, #tpu.memory_space<vmem>>, vector<64x256xf32>
    %cst_87 = arith.constant dense<0.000000e+00> : vector<2x256xf32>
    %328 = tpu.matmul %326, %327, %cst_87 {dimension_numbers = #tpu.dot_dimension_numbers<[1], [0], [0], [1], [0, 0, 1, 1], [], []>} : vector<2x64xf32>, vector<64x256xf32>, vector<2x256xf32> -> vector<2x256xf32>
    %c2_i32_88 = arith.constant 2 : i32
    %329 = arith.muli %c4_i32, %c2_i32_88 : i32
    %330 = tpu.assume_multiple %329, 2 : i32
    %331 = arith.index_cast %330 : i32 to index
    %c0_89 = arith.constant 0 : index
    %332 = vector.load %arg16[%331, %c0_89] : memref<16x128xf32, #tpu.memory_space<vmem>>, vector<2x128xf32>
    %333 = vector.extract_strided_slice %328 {offsets = [0, 0], sizes = [2, 128], strides = [1, 1]} : vector<2x256xf32> to vector<2x128xf32>
    %334 = arith.addf %332, %333 : vector<2x128xf32>
    %c2_i32_90 = arith.constant 2 : i32
    %335 = arith.muli %325, %c2_i32_90 : i32
    %336 = tpu.assume_multiple %335, 2 : i32
    %337 = arith.index_cast %336 : i32 to index
    %c0_91 = arith.constant 0 : index
    %338 = vector.load %arg17[%337, %c0_91] : memref<16x128xf32, #tpu.memory_space<vmem>>, vector<2x128xf32>
    %339 = vector.extract_strided_slice %328 {offsets = [0, 128], sizes = [2, 128], strides = [1, 1]} : vector<2x256xf32> to vector<2x128xf32>
    %340 = arith.addf %338, %339 : vector<2x128xf32>
    %341 = arith.index_cast %c4_i32 : i32 to index
    %c0_92 = arith.constant 0 : index
    %c0_93 = arith.constant 0 : index
    %342 = vector.load %arg2[%341, %c0_92, %c0_93] : memref<8x2x1xf32, #tpu.memory_space<vmem>>, vector<1x2x1xf32>
    %343 = vector.shape_cast %342 : vector<1x2x1xf32> to vector<2x1xf32>
    %344 = vector.extract_strided_slice %334 {offsets = [0, 0], sizes = [2, 96], strides = [1, 1]} : vector<2x128xf32> to vector<2x96xf32>
    %345 = arith.negf %344 : vector<2x96xf32>
    %346 = math.exp %345 : vector<2x96xf32>
    %cst_94 = arith.constant 1.000000e+00 : f32
    %347 = vector.broadcast %cst_94 : f32 to vector<2x96xf32>
    %348 = arith.addf %347, %346 : vector<2x96xf32>
    %349 = arith.divf %347, %348 : vector<2x96xf32>
    %350 = vector.extract_strided_slice %334 {offsets = [0, 96], sizes = [2, 32], strides = [1, 1]} : vector<2x128xf32> to vector<2x32xf32>
    %351 = math.tanh %350 : vector<2x32xf32>
    %352 = vector.extract_strided_slice %349 {offsets = [0, 32], sizes = [2, 32], strides = [1, 1]} : vector<2x96xf32> to vector<2x32xf32>
    %353 = arith.mulf %352, %291 : vector<2x32xf32>
    %354 = vector.extract_strided_slice %349 {offsets = [0, 0], sizes = [2, 32], strides = [1, 1]} : vector<2x96xf32> to vector<2x32xf32>
    %355 = arith.mulf %354, %351 : vector<2x32xf32>
    %356 = arith.addf %353, %355 : vector<2x32xf32>
    %357 = vector.extract_strided_slice %349 {offsets = [0, 64], sizes = [2, 32], strides = [1, 1]} : vector<2x96xf32> to vector<2x32xf32>
    %358 = math.tanh %356 : vector<2x32xf32>
    %359 = arith.mulf %357, %358 : vector<2x32xf32>
    %cst_95 = arith.constant 0.000000e+00 : f32
    %360 = vector.broadcast %cst_95 : f32 to vector<2x1xf32>
    %361 = arith.cmpf ogt, %343, %360 : vector<2x1xf32>
    %362 = vector.shape_cast %361 : vector<2x1xi1> to vector<2x1xi1>
    %363 = vector.broadcast %362 : vector<2x1xi1> to vector<2x32xi1>
    %364 = arith.select %363, %359, %288 : vector<2x32xi1>, vector<2x32xf32>
    %365 = vector.shape_cast %361 : vector<2x1xi1> to vector<2x1xi1>
    %366 = vector.broadcast %365 : vector<2x1xi1> to vector<2x32xi1>
    %367 = arith.select %366, %356, %291 : vector<2x32xi1>, vector<2x32xf32>
    %368 = vector.broadcast %343 : vector<2x1xf32> to vector<2x32xf32>
    %369 = arith.mulf %364, %368 : vector<2x32xf32>
    %370 = arith.addf %294, %369 : vector<2x32xf32>
    %371 = arith.index_cast %325 : i32 to index
    %c0_96 = arith.constant 0 : index
    %c0_97 = arith.constant 0 : index
    %372 = vector.load %arg2[%371, %c0_96, %c0_97] : memref<8x2x1xf32, #tpu.memory_space<vmem>>, vector<1x2x1xf32>
    %373 = vector.shape_cast %372 : vector<1x2x1xf32> to vector<2x1xf32>
    %374 = vector.extract_strided_slice %340 {offsets = [0, 0], sizes = [2, 96], strides = [1, 1]} : vector<2x128xf32> to vector<2x96xf32>
    %375 = arith.negf %374 : vector<2x96xf32>
    %376 = math.exp %375 : vector<2x96xf32>
    %cst_98 = arith.constant 1.000000e+00 : f32
    %377 = vector.broadcast %cst_98 : f32 to vector<2x96xf32>
    %378 = arith.addf %377, %376 : vector<2x96xf32>
    %379 = arith.divf %377, %378 : vector<2x96xf32>
    %380 = vector.extract_strided_slice %340 {offsets = [0, 96], sizes = [2, 32], strides = [1, 1]} : vector<2x128xf32> to vector<2x32xf32>
    %381 = math.tanh %380 : vector<2x32xf32>
    %382 = vector.extract_strided_slice %379 {offsets = [0, 32], sizes = [2, 32], strides = [1, 1]} : vector<2x96xf32> to vector<2x32xf32>
    %383 = arith.mulf %382, %321 : vector<2x32xf32>
    %384 = vector.extract_strided_slice %379 {offsets = [0, 0], sizes = [2, 32], strides = [1, 1]} : vector<2x96xf32> to vector<2x32xf32>
    %385 = arith.mulf %384, %381 : vector<2x32xf32>
    %386 = arith.addf %383, %385 : vector<2x32xf32>
    %387 = vector.extract_strided_slice %379 {offsets = [0, 64], sizes = [2, 32], strides = [1, 1]} : vector<2x96xf32> to vector<2x32xf32>
    %388 = math.tanh %386 : vector<2x32xf32>
    %389 = arith.mulf %387, %388 : vector<2x32xf32>
    %cst_99 = arith.constant 0.000000e+00 : f32
    %390 = vector.broadcast %cst_99 : f32 to vector<2x1xf32>
    %391 = arith.cmpf ogt, %373, %390 : vector<2x1xf32>
    %392 = vector.shape_cast %391 : vector<2x1xi1> to vector<2x1xi1>
    %393 = vector.broadcast %392 : vector<2x1xi1> to vector<2x32xi1>
    %394 = arith.select %393, %389, %318 : vector<2x32xi1>, vector<2x32xf32>
    %395 = vector.shape_cast %391 : vector<2x1xi1> to vector<2x1xi1>
    %396 = vector.broadcast %395 : vector<2x1xi1> to vector<2x32xi1>
    %397 = arith.select %396, %386, %321 : vector<2x32xi1>, vector<2x32xf32>
    %398 = vector.broadcast %373 : vector<2x1xf32> to vector<2x32xf32>
    %399 = arith.mulf %394, %398 : vector<2x32xf32>
    %400 = arith.addf %324, %399 : vector<2x32xf32>
    %c5_i32 = arith.constant 5 : i32
    %c7_i32_100 = arith.constant 7 : i32
    %401 = arith.subi %c7_i32_100, %c5_i32 : i32
    %402 = tpu.concatenate %364, %394 in 1 : vector<2x32xf32>, vector<2x32xf32> -> vector<2x64xf32>
    %c0_101 = arith.constant 0 : index
    %c0_102 = arith.constant 0 : index
    %403 = vector.load %arg9[%c0_101, %c0_102] : memref<64x256xf32, #tpu.memory_space<vmem>>, vector<64x256xf32>
    %cst_103 = arith.constant dense<0.000000e+00> : vector<2x256xf32>
    %404 = tpu.matmul %402, %403, %cst_103 {dimension_numbers = #tpu.dot_dimension_numbers<[1], [0], [0], [1], [0, 0, 1, 1], [], []>} : vector<2x64xf32>, vector<64x256xf32>, vector<2x256xf32> -> vector<2x256xf32>
    %c2_i32_104 = arith.constant 2 : i32
    %405 = arith.muli %c5_i32, %c2_i32_104 : i32
    %406 = tpu.assume_multiple %405, 2 : i32
    %407 = arith.index_cast %406 : i32 to index
    %c0_105 = arith.constant 0 : index
    %408 = vector.load %arg16[%407, %c0_105] : memref<16x128xf32, #tpu.memory_space<vmem>>, vector<2x128xf32>
    %409 = vector.extract_strided_slice %404 {offsets = [0, 0], sizes = [2, 128], strides = [1, 1]} : vector<2x256xf32> to vector<2x128xf32>
    %410 = arith.addf %408, %409 : vector<2x128xf32>
    %c2_i32_106 = arith.constant 2 : i32
    %411 = arith.muli %401, %c2_i32_106 : i32
    %412 = tpu.assume_multiple %411, 2 : i32
    %413 = arith.index_cast %412 : i32 to index
    %c0_107 = arith.constant 0 : index
    %414 = vector.load %arg17[%413, %c0_107] : memref<16x128xf32, #tpu.memory_space<vmem>>, vector<2x128xf32>
    %415 = vector.extract_strided_slice %404 {offsets = [0, 128], sizes = [2, 128], strides = [1, 1]} : vector<2x256xf32> to vector<2x128xf32>
    %416 = arith.addf %414, %415 : vector<2x128xf32>
    %417 = arith.index_cast %c5_i32 : i32 to index
    %c0_108 = arith.constant 0 : index
    %c0_109 = arith.constant 0 : index
    %418 = vector.load %arg2[%417, %c0_108, %c0_109] : memref<8x2x1xf32, #tpu.memory_space<vmem>>, vector<1x2x1xf32>
    %419 = vector.shape_cast %418 : vector<1x2x1xf32> to vector<2x1xf32>
    %420 = vector.extract_strided_slice %410 {offsets = [0, 0], sizes = [2, 96], strides = [1, 1]} : vector<2x128xf32> to vector<2x96xf32>
    %421 = arith.negf %420 : vector<2x96xf32>
    %422 = math.exp %421 : vector<2x96xf32>
    %cst_110 = arith.constant 1.000000e+00 : f32
    %423 = vector.broadcast %cst_110 : f32 to vector<2x96xf32>
    %424 = arith.addf %423, %422 : vector<2x96xf32>
    %425 = arith.divf %423, %424 : vector<2x96xf32>
    %426 = vector.extract_strided_slice %410 {offsets = [0, 96], sizes = [2, 32], strides = [1, 1]} : vector<2x128xf32> to vector<2x32xf32>
    %427 = math.tanh %426 : vector<2x32xf32>
    %428 = vector.extract_strided_slice %425 {offsets = [0, 32], sizes = [2, 32], strides = [1, 1]} : vector<2x96xf32> to vector<2x32xf32>
    %429 = arith.mulf %428, %367 : vector<2x32xf32>
    %430 = vector.extract_strided_slice %425 {offsets = [0, 0], sizes = [2, 32], strides = [1, 1]} : vector<2x96xf32> to vector<2x32xf32>
    %431 = arith.mulf %430, %427 : vector<2x32xf32>
    %432 = arith.addf %429, %431 : vector<2x32xf32>
    %433 = vector.extract_strided_slice %425 {offsets = [0, 64], sizes = [2, 32], strides = [1, 1]} : vector<2x96xf32> to vector<2x32xf32>
    %434 = math.tanh %432 : vector<2x32xf32>
    %435 = arith.mulf %433, %434 : vector<2x32xf32>
    %cst_111 = arith.constant 0.000000e+00 : f32
    %436 = vector.broadcast %cst_111 : f32 to vector<2x1xf32>
    %437 = arith.cmpf ogt, %419, %436 : vector<2x1xf32>
    %438 = vector.shape_cast %437 : vector<2x1xi1> to vector<2x1xi1>
    %439 = vector.broadcast %438 : vector<2x1xi1> to vector<2x32xi1>
    %440 = arith.select %439, %435, %364 : vector<2x32xi1>, vector<2x32xf32>
    %441 = vector.shape_cast %437 : vector<2x1xi1> to vector<2x1xi1>
    %442 = vector.broadcast %441 : vector<2x1xi1> to vector<2x32xi1>
    %443 = arith.select %442, %432, %367 : vector<2x32xi1>, vector<2x32xf32>
    %444 = vector.broadcast %419 : vector<2x1xf32> to vector<2x32xf32>
    %445 = arith.mulf %440, %444 : vector<2x32xf32>
    %446 = arith.addf %370, %445 : vector<2x32xf32>
    %447 = arith.index_cast %401 : i32 to index
    %c0_112 = arith.constant 0 : index
    %c0_113 = arith.constant 0 : index
    %448 = vector.load %arg2[%447, %c0_112, %c0_113] : memref<8x2x1xf32, #tpu.memory_space<vmem>>, vector<1x2x1xf32>
    %449 = vector.shape_cast %448 : vector<1x2x1xf32> to vector<2x1xf32>
    %450 = vector.extract_strided_slice %416 {offsets = [0, 0], sizes = [2, 96], strides = [1, 1]} : vector<2x128xf32> to vector<2x96xf32>
    %451 = arith.negf %450 : vector<2x96xf32>
    %452 = math.exp %451 : vector<2x96xf32>
    %cst_114 = arith.constant 1.000000e+00 : f32
    %453 = vector.broadcast %cst_114 : f32 to vector<2x96xf32>
    %454 = arith.addf %453, %452 : vector<2x96xf32>
    %455 = arith.divf %453, %454 : vector<2x96xf32>
    %456 = vector.extract_strided_slice %416 {offsets = [0, 96], sizes = [2, 32], strides = [1, 1]} : vector<2x128xf32> to vector<2x32xf32>
    %457 = math.tanh %456 : vector<2x32xf32>
    %458 = vector.extract_strided_slice %455 {offsets = [0, 32], sizes = [2, 32], strides = [1, 1]} : vector<2x96xf32> to vector<2x32xf32>
    %459 = arith.mulf %458, %397 : vector<2x32xf32>
    %460 = vector.extract_strided_slice %455 {offsets = [0, 0], sizes = [2, 32], strides = [1, 1]} : vector<2x96xf32> to vector<2x32xf32>
    %461 = arith.mulf %460, %457 : vector<2x32xf32>
    %462 = arith.addf %459, %461 : vector<2x32xf32>
    %463 = vector.extract_strided_slice %455 {offsets = [0, 64], sizes = [2, 32], strides = [1, 1]} : vector<2x96xf32> to vector<2x32xf32>
    %464 = math.tanh %462 : vector<2x32xf32>
    %465 = arith.mulf %463, %464 : vector<2x32xf32>
    %cst_115 = arith.constant 0.000000e+00 : f32
    %466 = vector.broadcast %cst_115 : f32 to vector<2x1xf32>
    %467 = arith.cmpf ogt, %449, %466 : vector<2x1xf32>
    %468 = vector.shape_cast %467 : vector<2x1xi1> to vector<2x1xi1>
    %469 = vector.broadcast %468 : vector<2x1xi1> to vector<2x32xi1>
    %470 = arith.select %469, %465, %394 : vector<2x32xi1>, vector<2x32xf32>
    %471 = vector.shape_cast %467 : vector<2x1xi1> to vector<2x1xi1>
    %472 = vector.broadcast %471 : vector<2x1xi1> to vector<2x32xi1>
    %473 = arith.select %472, %462, %397 : vector<2x32xi1>, vector<2x32xf32>
    %474 = vector.broadcast %449 : vector<2x1xf32> to vector<2x32xf32>
    %475 = arith.mulf %470, %474 : vector<2x32xf32>
    %476 = arith.addf %400, %475 : vector<2x32xf32>
    %c6_i32 = arith.constant 6 : i32
    %c7_i32_116 = arith.constant 7 : i32
    %477 = arith.subi %c7_i32_116, %c6_i32 : i32
    %478 = tpu.concatenate %440, %470 in 1 : vector<2x32xf32>, vector<2x32xf32> -> vector<2x64xf32>
    %c0_117 = arith.constant 0 : index
    %c0_118 = arith.constant 0 : index
    %479 = vector.load %arg9[%c0_117, %c0_118] : memref<64x256xf32, #tpu.memory_space<vmem>>, vector<64x256xf32>
    %cst_119 = arith.constant dense<0.000000e+00> : vector<2x256xf32>
    %480 = tpu.matmul %478, %479, %cst_119 {dimension_numbers = #tpu.dot_dimension_numbers<[1], [0], [0], [1], [0, 0, 1, 1], [], []>} : vector<2x64xf32>, vector<64x256xf32>, vector<2x256xf32> -> vector<2x256xf32>
    %c2_i32_120 = arith.constant 2 : i32
    %481 = arith.muli %c6_i32, %c2_i32_120 : i32
    %482 = tpu.assume_multiple %481, 2 : i32
    %483 = arith.index_cast %482 : i32 to index
    %c0_121 = arith.constant 0 : index
    %484 = vector.load %arg16[%483, %c0_121] : memref<16x128xf32, #tpu.memory_space<vmem>>, vector<2x128xf32>
    %485 = vector.extract_strided_slice %480 {offsets = [0, 0], sizes = [2, 128], strides = [1, 1]} : vector<2x256xf32> to vector<2x128xf32>
    %486 = arith.addf %484, %485 : vector<2x128xf32>
    %c2_i32_122 = arith.constant 2 : i32
    %487 = arith.muli %477, %c2_i32_122 : i32
    %488 = tpu.assume_multiple %487, 2 : i32
    %489 = arith.index_cast %488 : i32 to index
    %c0_123 = arith.constant 0 : index
    %490 = vector.load %arg17[%489, %c0_123] : memref<16x128xf32, #tpu.memory_space<vmem>>, vector<2x128xf32>
    %491 = vector.extract_strided_slice %480 {offsets = [0, 128], sizes = [2, 128], strides = [1, 1]} : vector<2x256xf32> to vector<2x128xf32>
    %492 = arith.addf %490, %491 : vector<2x128xf32>
    %493 = arith.index_cast %c6_i32 : i32 to index
    %c0_124 = arith.constant 0 : index
    %c0_125 = arith.constant 0 : index
    %494 = vector.load %arg2[%493, %c0_124, %c0_125] : memref<8x2x1xf32, #tpu.memory_space<vmem>>, vector<1x2x1xf32>
    %495 = vector.shape_cast %494 : vector<1x2x1xf32> to vector<2x1xf32>
    %496 = vector.extract_strided_slice %486 {offsets = [0, 0], sizes = [2, 96], strides = [1, 1]} : vector<2x128xf32> to vector<2x96xf32>
    %497 = arith.negf %496 : vector<2x96xf32>
    %498 = math.exp %497 : vector<2x96xf32>
    %cst_126 = arith.constant 1.000000e+00 : f32
    %499 = vector.broadcast %cst_126 : f32 to vector<2x96xf32>
    %500 = arith.addf %499, %498 : vector<2x96xf32>
    %501 = arith.divf %499, %500 : vector<2x96xf32>
    %502 = vector.extract_strided_slice %486 {offsets = [0, 96], sizes = [2, 32], strides = [1, 1]} : vector<2x128xf32> to vector<2x32xf32>
    %503 = math.tanh %502 : vector<2x32xf32>
    %504 = vector.extract_strided_slice %501 {offsets = [0, 32], sizes = [2, 32], strides = [1, 1]} : vector<2x96xf32> to vector<2x32xf32>
    %505 = arith.mulf %504, %443 : vector<2x32xf32>
    %506 = vector.extract_strided_slice %501 {offsets = [0, 0], sizes = [2, 32], strides = [1, 1]} : vector<2x96xf32> to vector<2x32xf32>
    %507 = arith.mulf %506, %503 : vector<2x32xf32>
    %508 = arith.addf %505, %507 : vector<2x32xf32>
    %509 = vector.extract_strided_slice %501 {offsets = [0, 64], sizes = [2, 32], strides = [1, 1]} : vector<2x96xf32> to vector<2x32xf32>
    %510 = math.tanh %508 : vector<2x32xf32>
    %511 = arith.mulf %509, %510 : vector<2x32xf32>
    %cst_127 = arith.constant 0.000000e+00 : f32
    %512 = vector.broadcast %cst_127 : f32 to vector<2x1xf32>
    %513 = arith.cmpf ogt, %495, %512 : vector<2x1xf32>
    %514 = vector.shape_cast %513 : vector<2x1xi1> to vector<2x1xi1>
    %515 = vector.broadcast %514 : vector<2x1xi1> to vector<2x32xi1>
    %516 = arith.select %515, %511, %440 : vector<2x32xi1>, vector<2x32xf32>
    %517 = vector.shape_cast %513 : vector<2x1xi1> to vector<2x1xi1>
    %518 = vector.broadcast %517 : vector<2x1xi1> to vector<2x32xi1>
    %519 = arith.select %518, %508, %443 : vector<2x32xi1>, vector<2x32xf32>
    %520 = vector.broadcast %495 : vector<2x1xf32> to vector<2x32xf32>
    %521 = arith.mulf %516, %520 : vector<2x32xf32>
    %522 = arith.addf %446, %521 : vector<2x32xf32>
    %523 = arith.index_cast %477 : i32 to index
    %c0_128 = arith.constant 0 : index
    %c0_129 = arith.constant 0 : index
    %524 = vector.load %arg2[%523, %c0_128, %c0_129] : memref<8x2x1xf32, #tpu.memory_space<vmem>>, vector<1x2x1xf32>
    %525 = vector.shape_cast %524 : vector<1x2x1xf32> to vector<2x1xf32>
    %526 = vector.extract_strided_slice %492 {offsets = [0, 0], sizes = [2, 96], strides = [1, 1]} : vector<2x128xf32> to vector<2x96xf32>
    %527 = arith.negf %526 : vector<2x96xf32>
    %528 = math.exp %527 : vector<2x96xf32>
    %cst_130 = arith.constant 1.000000e+00 : f32
    %529 = vector.broadcast %cst_130 : f32 to vector<2x96xf32>
    %530 = arith.addf %529, %528 : vector<2x96xf32>
    %531 = arith.divf %529, %530 : vector<2x96xf32>
    %532 = vector.extract_strided_slice %492 {offsets = [0, 96], sizes = [2, 32], strides = [1, 1]} : vector<2x128xf32> to vector<2x32xf32>
    %533 = math.tanh %532 : vector<2x32xf32>
    %534 = vector.extract_strided_slice %531 {offsets = [0, 32], sizes = [2, 32], strides = [1, 1]} : vector<2x96xf32> to vector<2x32xf32>
    %535 = arith.mulf %534, %473 : vector<2x32xf32>
    %536 = vector.extract_strided_slice %531 {offsets = [0, 0], sizes = [2, 32], strides = [1, 1]} : vector<2x96xf32> to vector<2x32xf32>
    %537 = arith.mulf %536, %533 : vector<2x32xf32>
    %538 = arith.addf %535, %537 : vector<2x32xf32>
    %539 = vector.extract_strided_slice %531 {offsets = [0, 64], sizes = [2, 32], strides = [1, 1]} : vector<2x96xf32> to vector<2x32xf32>
    %540 = math.tanh %538 : vector<2x32xf32>
    %541 = arith.mulf %539, %540 : vector<2x32xf32>
    %cst_131 = arith.constant 0.000000e+00 : f32
    %542 = vector.broadcast %cst_131 : f32 to vector<2x1xf32>
    %543 = arith.cmpf ogt, %525, %542 : vector<2x1xf32>
    %544 = vector.shape_cast %543 : vector<2x1xi1> to vector<2x1xi1>
    %545 = vector.broadcast %544 : vector<2x1xi1> to vector<2x32xi1>
    %546 = arith.select %545, %541, %470 : vector<2x32xi1>, vector<2x32xf32>
    %547 = vector.shape_cast %543 : vector<2x1xi1> to vector<2x1xi1>
    %548 = vector.broadcast %547 : vector<2x1xi1> to vector<2x32xi1>
    %549 = arith.select %548, %538, %473 : vector<2x32xi1>, vector<2x32xf32>
    %550 = vector.broadcast %525 : vector<2x1xf32> to vector<2x32xf32>
    %551 = arith.mulf %546, %550 : vector<2x32xf32>
    %552 = arith.addf %476, %551 : vector<2x32xf32>
    %c7_i32_132 = arith.constant 7 : i32
    %c7_i32_133 = arith.constant 7 : i32
    %553 = arith.subi %c7_i32_133, %c7_i32_132 : i32
    %554 = tpu.concatenate %516, %546 in 1 : vector<2x32xf32>, vector<2x32xf32> -> vector<2x64xf32>
    %c0_134 = arith.constant 0 : index
    %c0_135 = arith.constant 0 : index
    %555 = vector.load %arg9[%c0_134, %c0_135] : memref<64x256xf32, #tpu.memory_space<vmem>>, vector<64x256xf32>
    %cst_136 = arith.constant dense<0.000000e+00> : vector<2x256xf32>
    %556 = tpu.matmul %554, %555, %cst_136 {dimension_numbers = #tpu.dot_dimension_numbers<[1], [0], [0], [1], [0, 0, 1, 1], [], []>} : vector<2x64xf32>, vector<64x256xf32>, vector<2x256xf32> -> vector<2x256xf32>
    %c2_i32_137 = arith.constant 2 : i32
    %557 = arith.muli %c7_i32_132, %c2_i32_137 : i32
    %558 = tpu.assume_multiple %557, 2 : i32
    %559 = arith.index_cast %558 : i32 to index
    %c0_138 = arith.constant 0 : index
    %560 = vector.load %arg16[%559, %c0_138] : memref<16x128xf32, #tpu.memory_space<vmem>>, vector<2x128xf32>
    %561 = vector.extract_strided_slice %556 {offsets = [0, 0], sizes = [2, 128], strides = [1, 1]} : vector<2x256xf32> to vector<2x128xf32>
    %562 = arith.addf %560, %561 : vector<2x128xf32>
    %c2_i32_139 = arith.constant 2 : i32
    %563 = arith.muli %553, %c2_i32_139 : i32
    %564 = tpu.assume_multiple %563, 2 : i32
    %565 = arith.index_cast %564 : i32 to index
    %c0_140 = arith.constant 0 : index
    %566 = vector.load %arg17[%565, %c0_140] : memref<16x128xf32, #tpu.memory_space<vmem>>, vector<2x128xf32>
    %567 = vector.extract_strided_slice %556 {offsets = [0, 128], sizes = [2, 128], strides = [1, 1]} : vector<2x256xf32> to vector<2x128xf32>
    %568 = arith.addf %566, %567 : vector<2x128xf32>
    %569 = arith.index_cast %c7_i32_132 : i32 to index
    %c0_141 = arith.constant 0 : index
    %c0_142 = arith.constant 0 : index
    %570 = vector.load %arg2[%569, %c0_141, %c0_142] : memref<8x2x1xf32, #tpu.memory_space<vmem>>, vector<1x2x1xf32>
    %571 = vector.shape_cast %570 : vector<1x2x1xf32> to vector<2x1xf32>
    %572 = vector.extract_strided_slice %562 {offsets = [0, 0], sizes = [2, 96], strides = [1, 1]} : vector<2x128xf32> to vector<2x96xf32>
    %573 = arith.negf %572 : vector<2x96xf32>
    %574 = math.exp %573 : vector<2x96xf32>
    %cst_143 = arith.constant 1.000000e+00 : f32
    %575 = vector.broadcast %cst_143 : f32 to vector<2x96xf32>
    %576 = arith.addf %575, %574 : vector<2x96xf32>
    %577 = arith.divf %575, %576 : vector<2x96xf32>
    %578 = vector.extract_strided_slice %562 {offsets = [0, 96], sizes = [2, 32], strides = [1, 1]} : vector<2x128xf32> to vector<2x32xf32>
    %579 = math.tanh %578 : vector<2x32xf32>
    %580 = vector.extract_strided_slice %577 {offsets = [0, 32], sizes = [2, 32], strides = [1, 1]} : vector<2x96xf32> to vector<2x32xf32>
    %581 = arith.mulf %580, %519 : vector<2x32xf32>
    %582 = vector.extract_strided_slice %577 {offsets = [0, 0], sizes = [2, 32], strides = [1, 1]} : vector<2x96xf32> to vector<2x32xf32>
    %583 = arith.mulf %582, %579 : vector<2x32xf32>
    %584 = arith.addf %581, %583 : vector<2x32xf32>
    %585 = vector.extract_strided_slice %577 {offsets = [0, 64], sizes = [2, 32], strides = [1, 1]} : vector<2x96xf32> to vector<2x32xf32>
    %586 = math.tanh %584 : vector<2x32xf32>
    %587 = arith.mulf %585, %586 : vector<2x32xf32>
    %cst_144 = arith.constant 0.000000e+00 : f32
    %588 = vector.broadcast %cst_144 : f32 to vector<2x1xf32>
    %589 = arith.cmpf ogt, %571, %588 : vector<2x1xf32>
    %590 = vector.shape_cast %589 : vector<2x1xi1> to vector<2x1xi1>
    %591 = vector.broadcast %590 : vector<2x1xi1> to vector<2x32xi1>
    %592 = arith.select %591, %587, %516 : vector<2x32xi1>, vector<2x32xf32>
    %593 = vector.shape_cast %589 : vector<2x1xi1> to vector<2x1xi1>
    %594 = vector.broadcast %593 : vector<2x1xi1> to vector<2x32xi1>
    %595 = arith.select %594, %584, %519 : vector<2x32xi1>, vector<2x32xf32>
    %596 = vector.broadcast %571 : vector<2x1xf32> to vector<2x32xf32>
    %597 = arith.mulf %592, %596 : vector<2x32xf32>
    %598 = arith.addf %522, %597 : vector<2x32xf32>
    %599 = arith.index_cast %553 : i32 to index
    %c0_145 = arith.constant 0 : index
    %c0_146 = arith.constant 0 : index
    %600 = vector.load %arg2[%599, %c0_145, %c0_146] : memref<8x2x1xf32, #tpu.memory_space<vmem>>, vector<1x2x1xf32>
    %601 = vector.shape_cast %600 : vector<1x2x1xf32> to vector<2x1xf32>
    %602 = vector.extract_strided_slice %568 {offsets = [0, 0], sizes = [2, 96], strides = [1, 1]} : vector<2x128xf32> to vector<2x96xf32>
    %603 = arith.negf %602 : vector<2x96xf32>
    %604 = math.exp %603 : vector<2x96xf32>
    %cst_147 = arith.constant 1.000000e+00 : f32
    %605 = vector.broadcast %cst_147 : f32 to vector<2x96xf32>
    %606 = arith.addf %605, %604 : vector<2x96xf32>
    %607 = arith.divf %605, %606 : vector<2x96xf32>
    %608 = vector.extract_strided_slice %568 {offsets = [0, 96], sizes = [2, 32], strides = [1, 1]} : vector<2x128xf32> to vector<2x32xf32>
    %609 = math.tanh %608 : vector<2x32xf32>
    %610 = vector.extract_strided_slice %607 {offsets = [0, 32], sizes = [2, 32], strides = [1, 1]} : vector<2x96xf32> to vector<2x32xf32>
    %611 = arith.mulf %610, %549 : vector<2x32xf32>
    %612 = vector.extract_strided_slice %607 {offsets = [0, 0], sizes = [2, 32], strides = [1, 1]} : vector<2x96xf32> to vector<2x32xf32>
    %613 = arith.mulf %612, %609 : vector<2x32xf32>
    %614 = arith.addf %611, %613 : vector<2x32xf32>
    %615 = vector.extract_strided_slice %607 {offsets = [0, 64], sizes = [2, 32], strides = [1, 1]} : vector<2x96xf32> to vector<2x32xf32>
    %616 = math.tanh %614 : vector<2x32xf32>
    %617 = arith.mulf %615, %616 : vector<2x32xf32>
    %cst_148 = arith.constant 0.000000e+00 : f32
    %618 = vector.broadcast %cst_148 : f32 to vector<2x1xf32>
    %619 = arith.cmpf ogt, %601, %618 : vector<2x1xf32>
    %620 = vector.shape_cast %619 : vector<2x1xi1> to vector<2x1xi1>
    %621 = vector.broadcast %620 : vector<2x1xi1> to vector<2x32xi1>
    %622 = arith.select %621, %617, %546 : vector<2x32xi1>, vector<2x32xf32>
    %623 = vector.shape_cast %619 : vector<2x1xi1> to vector<2x1xi1>
    %624 = vector.broadcast %623 : vector<2x1xi1> to vector<2x32xi1>
    %625 = arith.select %624, %614, %549 : vector<2x32xi1>, vector<2x32xf32>
    %626 = vector.broadcast %601 : vector<2x1xf32> to vector<2x32xf32>
    %627 = arith.mulf %622, %626 : vector<2x32xf32>
    %628 = arith.addf %552, %627 : vector<2x32xf32>
    %c8_i32 = arith.constant 8 : i32
    %c0_149 = arith.constant 0 : index
    %c0_150 = arith.constant 0 : index
    %629 = vector.load %arg10[%c0_149, %c0_150] : memref<32x32xf32, #tpu.memory_space<vmem>>, vector<32x32xf32>
    %cst_151 = arith.constant dense<0.000000e+00> : vector<2x32xf32>
    %630 = tpu.matmul %598, %629, %cst_151 {dimension_numbers = #tpu.dot_dimension_numbers<[1], [0], [0], [1], [0, 0, 1, 1], [], []>} : vector<2x32xf32>, vector<32x32xf32>, vector<2x32xf32> -> vector<2x32xf32>
    %c0_152 = arith.constant 0 : index
    %c0_153 = arith.constant 0 : index
    %631 = vector.load %arg11[%c0_152, %c0_153] : memref<32x32xf32, #tpu.memory_space<vmem>>, vector<32x32xf32>
    %cst_154 = arith.constant dense<0.000000e+00> : vector<2x32xf32>
    %632 = tpu.matmul %628, %631, %cst_154 {dimension_numbers = #tpu.dot_dimension_numbers<[1], [0], [0], [1], [0, 0, 1, 1], [], []>} : vector<2x32xf32>, vector<32x32xf32>, vector<2x32xf32> -> vector<2x32xf32>
    %633 = arith.addf %630, %632 : vector<2x32xf32>
    %c0_155 = arith.constant 0 : index
    %c0_156 = arith.constant 0 : index
    %634 = vector.load %arg12[%c0_155, %c0_156] : memref<1x32xf32, #tpu.memory_space<vmem>>, vector<1x32xf32>
    %635 = vector.broadcast %634 : vector<1x32xf32> to vector<2x32xf32>
    %636 = arith.addf %633, %635 : vector<2x32xf32>
    %cst_157 = arith.constant 0.000000e+00 : f32
    %637 = vector.broadcast %cst_157 : f32 to vector<2x32xf32>
    %638 = arith.maximumf %636, %637 : vector<2x32xf32>
    %c0_158 = arith.constant 0 : index
    %c0_159 = arith.constant 0 : index
    %639 = vector.load %arg13[%c0_158, %c0_159] : memref<32x128xf32, #tpu.memory_space<vmem>>, vector<32x128xf32>
    %cst_160 = arith.constant dense<0.000000e+00> : vector<2x128xf32>
    %640 = tpu.matmul %638, %639, %cst_160 {dimension_numbers = #tpu.dot_dimension_numbers<[1], [0], [0], [1], [0, 0, 1, 1], [], []>} : vector<2x32xf32>, vector<32x128xf32>, vector<2x128xf32> -> vector<2x128xf32>
    %c0_161 = arith.constant 0 : index
    %c0_162 = arith.constant 0 : index
    %641 = vector.load %arg14[%c0_161, %c0_162] : memref<1x128xf32, #tpu.memory_space<vmem>>, vector<1x128xf32>
    %642 = vector.broadcast %641 : vector<1x128xf32> to vector<2x128xf32>
    %643 = arith.addf %640, %642 : vector<2x128xf32>
    %c0_163 = arith.constant 0 : index
    %c0_164 = arith.constant 0 : index
    %644 = vector.load %arg15[%c0_163, %c0_164] : memref<2x128xf32, #tpu.memory_space<vmem>>, vector<2x128xf32>
    tpu.vector_store %arg15[%c0_163, %c0_164], %643 {strides = array<i32>} : memref<2x128xf32, #tpu.memory_space<vmem>>, vector<2x128xf32>,
    return
  }
  func.func @transform_0(%arg0: i32) -> (i32, i32) {
    %c0_i32 = arith.constant 0 : i32
    %c0_i32_0 = arith.constant 0 : i32
    %c0_i32_1 = arith.constant 0 : i32
    return %c0_i32, %c0_i32_0 : i32, i32
  }
  func.func @transform_1(%arg0: i32) -> (i32, i32, i32) {
    %c0_i32 = arith.constant 0 : i32
    %c0_i32_0 = arith.constant 0 : i32
    %c0_i32_1 = arith.constant 0 : i32
    %c0_i32_2 = arith.constant 0 : i32
    return %c0_i32, %c0_i32_0, %c0_i32_1 : i32, i32, i32
  }
  func.func @transform_2(%arg0: i32) -> (i32, i32) {
    %c0_i32 = arith.constant 0 : i32
    %c0_i32_0 = arith.constant 0 : i32
    %c0_i32_1 = arith.constant 0 : i32
    return %c0_i32, %c0_i32_0 : i32, i32
  }
  func.func @transform_3(%arg0: i32) -> (i32, i32) {
    %c0_i32 = arith.constant 0 : i32
    %c0_i32_0 = arith.constant 0 : i32
    %c0_i32_1 = arith.constant 0 : i32
    return %c0_i32, %c0_i32_0 : i32, i32
  }
  func.func @transform_4(%arg0: i32) -> (i32, i32) {
    %c0_i32 = arith.constant 0 : i32
    %c0_i32_0 = arith.constant 0 : i32
    %c0_i32_1 = arith.constant 0 : i32
    return %c0_i32, %c0_i32_0 : i32, i32
  }
  func.func @transform_5(%arg0: i32) -> (i32, i32) {
    %c0_i32 = arith.constant 0 : i32
    %c0_i32_0 = arith.constant 0 : i32
    %c0_i32_1 = arith.constant 0 : i32
    return %c0_i32, %c0_i32_0 : i32, i32
  }
  func.func @transform_6(%arg0: i32) -> (i32, i32) {
    %c0_i32 = arith.constant 0 : i32
    %c0_i32_0 = arith.constant 0 : i32
    %c0_i32_1 = arith.constant 0 : i32
    return %c0_i32, %c0_i32_0 : i32, i32
  }
  func.func @transform_7(%arg0: i32) -> (i32, i32) {
    %c0_i32 = arith.constant 0 : i32
    %c0_i32_0 = arith.constant 0 : i32
    %c0_i32_1 = arith.constant 0 : i32
    return %c0_i32, %c0_i32_0 : i32, i32
  }
  func.func @transform_8(%arg0: i32) -> (i32, i32) {
    %c0_i32 = arith.constant 0 : i32
    %c0_i32_0 = arith.constant 0 : i32
    %c0_i32_1 = arith.constant 0 : i32
    return %c0_i32, %c0_i32_0 : i32, i32
  }
  func.func @transform_9(%arg0: i32) -> (i32, i32) {
    %c0_i32 = arith.constant 0 : i32
    %c0_i32_0 = arith.constant 0 : i32
    %c0_i32_1 = arith.constant 0 : i32
    return %c0_i32, %c0_i32_0 : i32, i32
  }
  func.func @transform_10(%arg0: i32) -> (i32, i32) {
    %c0_i32 = arith.constant 0 : i32
    %c0_i32_0 = arith.constant 0 : i32
    %c0_i32_1 = arith.constant 0 : i32
    return %c0_i32, %c0_i32_0 : i32, i32
  }
  func.func @transform_11(%arg0: i32) -> (i32, i32) {
    %c0_i32 = arith.constant 0 : i32
    %c0_i32_0 = arith.constant 0 : i32
    %c0_i32_1 = arith.constant 0 : i32
    return %c0_i32, %c0_i32_0 : i32, i32
  }
  func.func @transform_12(%arg0: i32) -> (i32, i32) {
    %c0_i32 = arith.constant 0 : i32
    %c0_i32_0 = arith.constant 0 : i32
    %c0_i32_1 = arith.constant 0 : i32
    return %c0_i32, %c0_i32_0 : i32, i32
  }
  func.func @transform_13(%arg0: i32) -> (i32, i32) {
    %c0_i32 = arith.constant 0 : i32
    %c0_i32_0 = arith.constant 0 : i32
    %c0_i32_1 = arith.constant 0 : i32
    return %c0_i32, %c0_i32_0 : i32, i32
  }
  func.func @transform_14(%arg0: i32) -> (i32, i32) {
    %c0_i32 = arith.constant 0 : i32
    %c0_i32_0 = arith.constant 0 : i32
    %c0_i32_1 = arith.constant 0 : i32
    return %c0_i32, %c0_i32_0 : i32, i32
  }
}

</mosaic_0001>

<bundles_post_ra>
// kernel: tpu_custom_call.1
= control target key start
LH: loop header
LB: loop body
LE: loop exit
PB: predicated region body
PF: predicated region fallthrough
CT: control target
= control target key end

     0   :  { %19 = vsyncpa [#allocation5], 0  ;;  %s3202_s0 = inlined_call_operand.hbm [shape: f32[16,16], index: 0, kind: input, shape index: {}]   ;;  %s3203_s1 = inlined_call_operand.vmem [shape: f32[8,2,1], index: 1, kind: input, shape index: {}]   ;;  %s3204_s2 = inlined_call_operand.hbm [shape: f32[16,32], index: 2, kind: input, shape index: {}]   ;;  %s3205_s3 = inlined_call_operand.vmem [shape: f32[1,32], index: 3, kind: input, shape index: {}]   ;;  %s3206_s4 = inlined_call_operand.hbm [shape: f32[32,128], index: 4, kind: input, shape index: {}]   ;;  %s3207_s5 = inlined_call_operand.hbm [shape: f32[32,128], index: 5, kind: input, shape index: {}]   ;;  %s3208_s6 = inlined_call_operand.vmem [shape: f32[1,128], index: 6, kind: input, shape index: {}]   ;;  %s3209_s7 = inlined_call_operand.hbm [shape: f32[1,128], index: 7, kind: input, shape index: {}]   ;;  %s3210_s8 = inlined_call_operand.hbm [shape: f32[64,256], index: 8, kind: input, shape index: {}]   ;;  %s3211_s9 = inlined_call_operand.vmem [shape: f32[32,32], index: 9, kind: input, shape index: {}]   ;;  %s3212_s10 = inlined_call_operand.hbm [shape: f32[32,32], index: 10, kind: input, shape index: {}]   ;;  %s3213_s11 = inlined_call_operand.vmem [shape: f32[1,32], index: 11, kind: input, shape index: {}]   ;;  %s3214_s12 = inlined_call_operand.hbm [shape: f32[32,128], index: 12, kind: input, shape index: {}]   ;;  %s3215_s13 = inlined_call_operand.vmem [shape: f32[1,128], index: 13, kind: input, shape index: {}]   ;;  %s3216_s14 = inlined_call_operand.hbm [shape: f32[2,128], index: 14, kind: output, shape index: {}]  }
   0x1   :  { %20 = vsyncpa [#allocation8], 0 }
   0x2   :  { %21 = vsyncpa [#allocation11], 0 }
   0x3   :  { %22 = vsyncpa [#allocation14], 0 }
   0x4   :  { %23 = vsyncpa [#allocation17], 0 }
   0x5   :  { %24 = vsyncpa [#allocation6], 0  ;;  %s2451_s29 = smov [#allocation7]   ;;  %s2452_s15 = smov [#allocation10]  }
   0x6   :  { %s44_s30 = sshll.u32 %s2451_s29, 4  ;;  %s70_s16 = sshll.u32 %s2452_s15, 4  ;;  %s45_s30 = int_to_ptr.vmem [resolvable:$true] %s44_s30  ;;  %s71_s16 = int_to_ptr.vmem [resolvable:$true] %s70_s16 }
   0x7   :  { %s2267_s17 = scalar_lea.vmem %s45_s30, 256  ;;  %p2272_p1 = scmp.lt.s32.totalorder %s45_s30, %s45_s30 }
   0x8   :  { %p2268_p0 = scmp.ne.s32.totalorder %s45_s30, %s2267_s17  ;;  %p2273_p2 = scmp.lt.s32.totalorder %s2267_s17, %s2267_s17 }
   0xa   :  { %p2274_p3 = por %p2273_p2, %p2272_p1 }
   0xc   :  { %p2275_p4 = pnand %p2274_p3, %p2268_p0 }
   0xe   :  { %2278 = shalt.err (!%p2275_p4)
}
   0xf   :  { %s2453_s18 = smov 128   ;;  %s2454_s19 = smov 8  }
  0x10   :  { %50 = dma.hbm_to_vmem [thread:$0]  %s3204_s2, 256, %s45_s30, [#allocation8], %s2453_s18, %s2453_s18, %s2454_s19  }
  0x11   :  { %s2287_s22 = scalar_lea.vmem %s71_s16, 512  ;;  %p2292_p6 = scmp.lt.s32.totalorder %s71_s16, %s71_s16 }
  0x12   :  { %p2288_p5 = scmp.ne.s32.totalorder %s71_s16, %s2287_s22  ;;  %p2293_p7 = scmp.lt.s32.totalorder %s2287_s22, %s2287_s22 }
  0x14   :  { %p2294_p8 = por %p2293_p7, %p2292_p6 }
  0x16   :  { %p2295_p9 = pnand %p2294_p8, %p2288_p5 }
  0x18   :  { %2298 = shalt.err (!%p2295_p9)
}
  0x19   :  { %76 = dma.hbm_to_vmem [thread:$0]  %s3207_s5, 512, %s71_s16, [#allocation11], %s2453_s18, %s2453_s18, %s2454_s19  }
  0x1a   :  { %s2455_s25 = smov [#allocation13]  }
  0x1b   :  { %s94_s26 = sshll.u32 %s2455_s25, 4  ;;  %s95_s26 = int_to_ptr.vmem [resolvable:$true] %s94_s26 }
  0x1c   :  { %s2307_s27 = scalar_lea.vmem %s95_s26, 2048  ;;  %p2312_p11 = scmp.lt.s32.totalorder %s95_s26, %s95_s26 }
  0x1d   :  { %p2308_p10 = scmp.ne.s32.totalorder %s95_s26, %s2307_s27  ;;  %p2313_p12 = scmp.lt.s32.totalorder %s2307_s27, %s2307_s27 }
  0x1f   :  { %p2314_p13 = por %p2313_p12, %p2312_p11 }
  0x21   :  { %p2315_p0 = pnand %p2314_p13, %p2308_p10 }
  0x23   :  { %2318 = shalt.err (!%p2315_p0)
}
  0x24   :  { %s2456_s2 = smov 256   ;;  %s2457_s28 = smov 16  }
  0x25   :  { %100 = dma.hbm_to_vmem [thread:$0]  %s3210_s8, 2048, %s95_s26, [#allocation14], %s2456_s2, %s2456_s2, %s2457_s28  }
  0x26   :  { %s2458_s15 = smov [#allocation4]   ;;  %s2459_s5 = smov [#allocation9]  }
  0x27   :  { %s30_s17 = sshll.u32 %s2458_s15, 4  ;;  %s58_s16 = sshll.u32 %s2459_s5, 4  ;;  %s31_s17 = int_to_ptr.vmem [resolvable:$true] %s30_s17  ;;  %s59_s16 = int_to_ptr.vmem [resolvable:$true] %s58_s16 }
  0x28   :  { %s2327_s20 = scalar_lea.vmem %s31_s17, 256  ;;  %p2332_p2 = scmp.lt.s32.totalorder %s31_s17, %s31_s17 }
  0x29   :  { %p2328_p1 = scmp.ne.s32.totalorder %s31_s17, %s2327_s20  ;;  %p2333_p3 = scmp.lt.s32.totalorder %s2327_s20, %s2327_s20 }
  0x2b   :  { %p2334_p4 = por %p2333_p3, %p2332_p2 }
  0x2d   :  { %p2335_p5 = pnand %p2334_p4, %p2328_p1 }
  0x2f   :  { %2338 = shalt.err (!%p2335_p5)
}
  0x30   :  { %36 = dma.hbm_to_vmem [thread:$0]  %s3202_s0, 256, %s31_s17, [#allocation5], %s2453_s18, %s2453_s18, %s2454_s19  }
  0x31   :  { %s2347_s8 = scalar_lea.vmem %s59_s16, 512  ;;  %p2352_p7 = scmp.lt.s32.totalorder %s59_s16, %s59_s16 }
  0x32   :  { %p2348_p6 = scmp.ne.s32.totalorder %s59_s16, %s2347_s8  ;;  %p2353_p8 = scmp.lt.s32.totalorder %s2347_s8, %s2347_s8 }
  0x34   :  { %p2354_p9 = por %p2353_p8, %p2352_p7 }
  0x36   :  { %p2355_p10 = pnand %p2354_p9, %p2348_p6 }
  0x38   :  { %2358 = shalt.err (!%p2355_p10)
}
  0x39   :  { %64 = dma.hbm_to_vmem [thread:$0]  %s3206_s4, 512, %s59_s16, [#allocation8], %s2453_s18, %s2453_s18, %s2454_s19  }
  0x3a   :  { %s2460_s25 = smov [#allocation12]   ;;  %s2461_s27 = smov [#allocation15]  }
  0x3b   :  { %s85_s26 = sshll.u32 %s2460_s25, 4  ;;  %s108_s0 = sshll.u32 %s2461_s27, 4  ;;  %s86_s26 = int_to_ptr.vmem [resolvable:$true] %s85_s26  ;;  %s109_s0 = int_to_ptr.vmem [resolvable:$true] %s108_s0 }
  0x3c   :  { %s2367_s2 = scalar_lea.vmem %s86_s26, 16  ;;  %s2371_s28 = scalar_lea.vmem %s86_s26, 32 }
  0x3d   :  { %p2368_p11 = scmp.ne.s32.totalorder %s86_s26, %s2367_s2  ;;  %p2372_p12 = scmp.lt.s32.totalorder %s86_s26, %s86_s26 }
  0x3e   :  { %p2373_p13 = scmp.lt.s32.totalorder %s2371_s28, %s2367_s2 }
  0x40   :  { %p2374_p0 = por %p2373_p13, %p2372_p12 }
  0x42   :  { %p2375_p1 = pnand %p2374_p0, %p2368_p11 }
  0x44   :  { %2378 = shalt.err (!%p2375_p1)
}
  0x45   :  { %88 = dma.hbm_to_vmem [thread:$0]  %s3209_s7, 16, %s86_s26, [#allocation11]  }
  0x46   :  { %s2387_s15 = scalar_lea.vmem %s109_s0, 512  ;;  %p2392_p3 = scmp.lt.s32.totalorder %s109_s0, %s109_s0 }
  0x47   :  { %p2388_p2 = scmp.ne.s32.totalorder %s109_s0, %s2387_s15  ;;  %p2393_p4 = scmp.lt.s32.totalorder %s2387_s15, %s2387_s15 }
  0x49   :  { %p2394_p5 = por %p2393_p4, %p2392_p3 }
  0x4b   :  { %p2395_p6 = pnand %p2394_p5, %p2388_p2 }
  0x4d   :  { %2398 = shalt.err (!%p2395_p6)
}
  0x4e   :  { %114 = dma.hbm_to_vmem [thread:$0]  %s3212_s10, 512, %s109_s0, [#allocation14], %s2453_s18, %s2453_s18, %s2454_s19  }
  0x4f   :  { %s2462_s5 = smov [#allocation16]  }
  0x50   :  { %s122_s16 = sshll.u32 %s2462_s5, 4  ;;  %s123_s16 = int_to_ptr.vmem [resolvable:$true] %s122_s16 }
  0x51   :  { %s2407_s20 = scalar_lea.vmem %s123_s16, 512  ;;  %p2412_p8 = scmp.lt.s32.totalorder %s123_s16, %s123_s16 }
  0x52   :  { %p2408_p7 = scmp.ne.s32.totalorder %s123_s16, %s2407_s20  ;;  %p2413_p9 = scmp.lt.s32.totalorder %s2407_s20, %s2407_s20 }
  0x54   :  { %p2414_p10 = por %p2413_p9, %p2412_p8 }
  0x56   :  { %p2415_p11 = pnand %p2414_p10, %p2408_p7 }
  0x58   :  { %2418 = shalt.err (!%p2415_p11)
}
  0x59   :  { %128 = dma.hbm_to_vmem [thread:$0]  %s3214_s12, 512, %s123_s16, [#allocation17], %s2453_s18, %s2453_s18, %s2454_s19  }
  0x5a   :  { %2439 = dma.done.wait [#allocation5], 256  }
  0x5b   :  { %2440 = vsyncadd [#allocation5], 4294967040 }
  0x5c   :  { %2441 = dma.done.wait [#allocation8], 768  }
  0x5d   :  { %2442 = vsyncadd [#allocation8], 4294966528 }
  0x5e   :  { %2443 = dma.done.wait [#allocation11], 528  }
  0x5f   :  { %2444 = vsyncadd [#allocation11], 4294966768 }
  0x60   :  { %2445 = dma.done.wait [#allocation14], 2560  }
  0x61   :  { %2446 = vsyncadd [#allocation14], 4294964736 }
  0x62   :  { %2447 = dma.done.wait [#allocation17], 512  }
  0x63   :  { %2448 = vsyncadd [#allocation17], 4294966784  ;;  %vm166_vm0 = vcmask 130048   ;;  %v158_v0 = vld [vmem:[#allocation7 + $0x8] sm:$0xff]  ;;  %v157_v1 = vld [vmem:[#allocation7] sm:$0xff]  ;;  %vm261_vm1 = vcmask 261120  }
  0x64   :  { %v155_v2 = vld [vmem:[#allocation4] sm:$0xff]  ;;  %2046 = vmatprep.subr.mxu0 %v158_v0  ;;  %v253_v3 = vld [vmem:[#allocation9 + $0x18] sm:$0xff]  ;;  %v156_v4 = vld [vmem:[#allocation4 + $0x8] sm:$0xff]  ;;  %v2463_v24 = vmov 0.0   ;;  %v2464_v36 = vmov 0   ;;  %s2465_s22 = smov 32  }
  0x65   :  { %2050 = vmatprep.mubr.msk.f32.mxu0 %vm166_vm0, %v155_v2  ;;  %2047 = vmatpush3.msra.mxu0 %v158_v0  ;;  %v348_v5 = vld [vmem:[#allocation10 + $0x18] sm:$0xff]  ;;  %v252_v6 = vld [vmem:[#allocation9 + $0x10] sm:$0xff]  ;;  %v251_v8 = vld [vmem:[#allocation9 + $0x8] sm:$0xff]  ;;  %s2466_s24 = smov 64   ;;  %s2467_s25 = smov 96   ;;  %vm449_vm6 = vcmask 523264  }
  0x66   :  { %2053 = vmatprep.subr.mxu1 %v253_v3  ;;  %2048 = vmatprep.subr.mxu0 %v157_v1  ;;  %v347_v7 = vld [vmem:[#allocation10 + $0x10] sm:$0xff]  ;;  %v346_v9 = vld [vmem:[#allocation10 + $0x8] sm:$0xff]  ;;  %v250_v10 = vld [vmem:[#allocation9] sm:$0xff]  ;;  %s2469_s26 = smov [#allocation18]  }
  0x67   :  { %2054 = vmatpush3.msra.mxu1 %v253_v3  ;;  %2049 = vmatpush3.msra.mxu0 %v157_v1  ;;  %v345_v11 = vld [vmem:[#allocation10] sm:$0xff]  ;;  %v2594_v20 = vld [vmem:[#allocation13 + $0x70] sm:$0xff]  ;;  %v2598_v21 = vld [vmem:[#allocation13 + $0x68] sm:$0xff]  ;;  %s1958_s27 = sshll.u32 %s2469_s26, 4  ;;  %s1959_s27 = int_to_ptr.vmem [resolvable:$true] %s1958_s27 }
  0x68   :  { %2051 = vmatmul.mubr.msk.f32.vlgmr.msra.gmra.mxu0 %vm166_vm0, %v156_v4  ;;  %2064 = vmatprep.subr.mxu0 %v348_v5  ;;  %v2587_v12 = vld [vmem:[#allocation13 + $0x78] sm:$0xff]  ;;  %v2602_v22 = vld [vmem:[#allocation13 + $0x60] sm:$0xff]  ;;  %v2609_v25 = vld [vmem:[#allocation13 + $0x50] sm:$0xff]  ;;  %s2419_s0 = scalar_lea.vmem %s1959_s27, 32  ;;  %p2424_p13 = scmp.lt.s32.totalorder %s1959_s27, %s1959_s27 }
  0x69   :  { %2055 = vmatprep.subr.mxu1 %v252_v6  ;;  %2065 = vmatpush3.msra.mxu0 %v348_v5  ;;  %v1971_v13 = vld [vmem:[%s3205_s3] ss:$0 sm:$0xff]  ;;  %v2613_v26 = vld [vmem:[#allocation13 + $0x48] sm:$0xff]  ;;  %v2617_v27 = vld [vmem:[#allocation13 + $0x40] sm:$0xff]  ;;  %p2420_p12 = scmp.ne.s32.totalorder %s1959_s27, %s2419_s0  ;;  %p2425_p0 = scmp.lt.s32.totalorder %s2419_s0, %s2419_s0 }
  0x6a   :  { %2056 = vmatpush3.msra.mxu1 %v252_v6  ;;  %2066 = vmatprep.subr.mxu0 %v347_v7  ;;  %v2605_v23 = vld [vmem:[#allocation13 + $0x58] sm:$0xff]  ;;  %v2625_v29 = vld [vmem:[#allocation13 + $0x30] sm:$0xff]  ;;  %v2629_v30 = vld [vmem:[#allocation13 + $0x28] sm:$0xff] }
  0x6b   :  { %2057 = vmatprep.subr.mxu1 %v251_v8  ;;  %2067 = vmatpush3.msra.mxu0 %v347_v7  ;;  %v2621_v28 = vld [vmem:[#allocation13 + $0x38] sm:$0xff]  ;;  %v2633_v31 = vld [vmem:[#allocation13 + $0x20] sm:$0xff]  ;;  %v2641_v33 = vld [vmem:[#allocation13 + $0x10] sm:$0xff]  ;;  %p2426_p1 = por %p2425_p0, %p2424_p13 }
  0x6c   :  { %2058 = vmatpush3.msra.mxu1 %v251_v8  ;;  %2068 = vmatprep.subr.mxu0 %v346_v9  ;;  %v2637_v32 = vld [vmem:[#allocation13 + $0x18] sm:$0xff]  ;;  %v2645_v34 = vld [vmem:[#allocation13 + $0x8] sm:$0xff]  ;;  %v2649_v35 = vld [vmem:[#allocation13] sm:$0xff] }
  0x6d   :  { %2059 = vmatprep.subr.mxu1 %v250_v10  ;;  %2069 = vmatpush3.msra.mxu0 %v346_v9  ;;  %v1974_v37 = vld [vmem:[%s3208_s6] ss:$0 sm:$0xff]  ;;  %v1981_v2 = vld [vmem:[%s3203_s1 + $0xe] sm:$0x3]  ;;  %p2427_p2 = pnand %p2426_p1, %p2420_p12 }
  0x6e   :  { %2060 = vmatpush3.msra.mxu1 %v250_v10  ;;  %2070 = vmatprep.subr.mxu0 %v345_v11  ;;  %v1977_v38 = vld [vmem:[#allocation12] ss:$0 sm:$0xff]  ;;  %vm595_vm3 = vcmp.gt.f32.partialorder %v1981_v2, 0.0 }
  0x6f   :  { %2071 = vmatpush3.msra.mxu0 %v345_v11  ;;  %469 = vmatprep.subr.mxu1 %v2587_v12  ;;  %v529_v54 = vld [vmem:[%s3203_s1] sm:$0x3]  ;;  %v596_v6 = vsel %vm595_vm3, 1, %v2464_v36 }
  0x70   :  { %638 = vmatprep.subr.mxu0 %v2587_v12  ;;  %2127 = vset.pattern.permute.xlu0 %v2464_v36  ;;  %vm554_vm2 = vcmp.gt.f32.partialorder %v529_v54, 0.0 }
  0x71   :  { %2128 = vset.pattern.permute.xlu1 %v2464_v36  ;;  %v555_v56 = vsel %vm554_vm2, 1, %v2464_v36 }
 0x128   :  { %v2052_v14 = vpop.f32.mrf.mxu0 }
 0x129   :  { %v245_v15 = vadd.f32 %v2052_v14, %v1971_v13 }
 0x12a   :  { %v239_v16 = vpop.f32.mrf.mxu0 }
 0x12b   :  { %v240_v17 = vadd.f32 %v1971_v13, %v239_v16  ;;  %v249_v19 = vmax.f32 %v245_v15, 0.0 }
 0x12d   :  { %v248_v18 = vmax.f32 %v240_v17, 0.0 }
 0x12f   :  { %2061 = vmatprep.mubr.msk.f32.mxu1 %vm261_vm1, %v248_v18  ;;  %2072 = vmatprep.mubr.msk.f32.mxu0 %vm261_vm1, %v248_v18 }
 0x130   :  { %2062 = vmatmul.mubr.msk.f32.vlgmr.msra.gmra.mxu1 %vm261_vm1, %v249_v19  ;;  %2073 = vmatmul.mubr.msk.f32.vlgmr.msra.gmra.mxu0 %vm261_vm1, %v249_v19 }
 0x131   :  { %470 = vmatpush1.msra.mxu1 %v2594_v20  ;;  %517 = vmatprep.mubr.f32.mxu1 %v2463_v24 }
 0x132   :  { %471 = vmatprep.subr.mxu1 %v2598_v21  ;;  %639 = vmatpush1.msra.mxu0 %v2594_v20 }
 0x133   :  { %472 = vmatpush1.msra.mxu1 %v2602_v22  ;;  %640 = vmatprep.subr.mxu0 %v2598_v21 }
 0x134   :  { %473 = vmatprep.subr.mxu1 %v2605_v23  ;;  %641 = vmatpush1.msra.mxu0 %v2602_v22 }
 0x135   :  { %474 = vmatpush1.msra.mxu1 %v2609_v25  ;;  %642 = vmatprep.subr.mxu0 %v2605_v23 }
 0x136   :  { %475 = vmatprep.subr.mxu1 %v2613_v26  ;;  %643 = vmatpush1.msra.mxu0 %v2609_v25 }
 0x137   :  { %476 = vmatpush1.msra.mxu1 %v2617_v27  ;;  %644 = vmatprep.subr.mxu0 %v2613_v26 }
 0x138   :  { %477 = vmatprep.subr.mxu1 %v2621_v28  ;;  %645 = vmatpush1.msra.mxu0 %v2617_v27 }
 0x139   :  { %478 = vmatpush1.msra.mxu1 %v2625_v29  ;;  %646 = vmatprep.subr.mxu0 %v2621_v28 }
 0x13a   :  { %479 = vmatprep.subr.mxu1 %v2629_v30  ;;  %647 = vmatpush1.msra.mxu0 %v2625_v29 }
 0x13b   :  { %480 = vmatpush1.msra.mxu1 %v2633_v31  ;;  %648 = vmatprep.subr.mxu0 %v2629_v30 }
 0x13c   :  { %481 = vmatprep.subr.mxu1 %v2637_v32  ;;  %649 = vmatpush1.msra.mxu0 %v2633_v31 }
 0x13d   :  { %482 = vmatpush1.msra.mxu1 %v2641_v33  ;;  %650 = vmatprep.subr.mxu0 %v2637_v32 }
 0x13e   :  { %483 = vmatprep.subr.mxu1 %v2645_v34  ;;  %651 = vmatpush1.msra.mxu0 %v2641_v33 }
 0x13f   :  { %484 = vmatpush1.msra.mxu1 %v2649_v35  ;;  %652 = vmatprep.subr.mxu0 %v2645_v34 }
 0x140   :  { %518 = vmatmul.mubr.f32.vlgmr.msra.gmra.mxu1 %v2463_v24  ;;  %653 = vmatpush1.msra.mxu0 %v2649_v35 }
 0x141   :  { %686 = vmatprep.mubr.f32.mxu0 %v2463_v24  ;;  %809 = vmatprep.subr.mxu1 %v2587_v12 }
 0x142   :  { %810 = vmatpush1.msra.mxu1 %v2594_v20  ;;  %857 = vmatprep.mubr.f32.mxu1 %v2463_v24 }
 0x143   :  { %811 = vmatprep.subr.mxu1 %v2598_v21  ;;  %980 = vmatprep.subr.mxu0 %v2587_v12 }
 0x144   :  { %812 = vmatpush1.msra.mxu1 %v2602_v22 }
 0x145   :  { %813 = vmatprep.subr.mxu1 %v2605_v23 }
 0x146   :  { %814 = vmatpush1.msra.mxu1 %v2609_v25 }
 0x147   :  { %815 = vmatprep.subr.mxu1 %v2613_v26 }
 0x148   :  { %816 = vmatpush1.msra.mxu1 %v2617_v27 }
 0x149   :  { %817 = vmatprep.subr.mxu1 %v2621_v28 }
 0x14a   :  { %818 = vmatpush1.msra.mxu1 %v2625_v29 }
 0x14b   :  { %819 = vmatprep.subr.mxu1 %v2629_v30 }
 0x14c   :  { %820 = vmatpush1.msra.mxu1 %v2633_v31 }
 0x14d   :  { %821 = vmatprep.subr.mxu1 %v2637_v32 }
 0x14e   :  { %822 = vmatpush1.msra.mxu1 %v2641_v33 }
 0x14f   :  { %823 = vmatprep.subr.mxu1 %v2645_v34 }
 0x150   :  { %824 = vmatpush1.msra.mxu1 %v2649_v35 }
 0x151   :  { %1151 = vmatprep.subr.mxu1 %v2587_v12 }
 0x1f0   :  { %v2063_v39 = vpop.f32.mrf.mxu1  ;;  %v2074_v40 = vpop.f32.mrf.mxu0 }
 0x1f1   :  { %v340_v41 = vadd.f32 %v2063_v39, %v1974_v37  ;;  %v428_v42 = vadd.f32 %v2074_v40, %v1977_v38 }
 0x1f2   :  { %v334_v43 = vpop.f32.mrf.mxu1  ;;  %v422_v44 = vpop.f32.mrf.mxu0 }
 0x1f3   :  { %344 = vst [vmem:[#allocation2 + $0x8] sm:$0xff] %v340_v41  ;;  %432 = vst [vmem:[#allocation3 + $0x8] sm:$0xff] %v428_v42  ;;  %v335_v45 = vadd.f32 %v1974_v37, %v334_v43  ;;  %v423_v46 = vadd.f32 %v1977_v38, %v422_v44 }
 0x1f5   :  { %343 = vst [vmem:[#allocation2] sm:$0xff] %v335_v45  ;;  %431 = vst [vmem:[#allocation3] sm:$0xff] %v423_v46 }
 0x1fa   :  { %v527_v51 = vld [vmem:[#allocation3 + $0xe] sm:$0x3] }
 0x1fc   :  { %v524_v48 = vld [vmem:[#allocation2] sm:$0x3]  ;;  %v694_v45 = vld [vmem:[#allocation2 + $0x2] sm:$0x3] }
 0x200   :  { %v519_v47 = vpop.f32.mrf.mxu1 }
 0x201   :  { %v525_v49 = vadd.f32 %v524_v48, %v519_v47  ;;  %v697_v48 = vld [vmem:[#allocation3 + $0xc] sm:$0x3] }
 0x202   :  { %v521_v50 = vpop.f32.mrf.mxu1 }
 0x203   :  { %2129 = vtanh.f32 %v525_v49  ;;  %v528_v52 = vadd.f32 %v527_v51, %v521_v50  ;;  %v1980_v57 = vmul.f32 -1.442695, %v525_v49 }
 0x205   :  { %2131 = vtanh.f32 %v528_v52  ;;  %v1982_v58 = vmul.f32 -1.442695, %v528_v52 }
 0x206   :  { %2133 = vpow2.f32 %v1980_v57 }
 0x207   :  { %2135 = vpow2.f32 %v1982_v58  ;;  %v2747_v58 = vld [vmem:[%s3203_s1 + $0x2] sm:$0x3] }
 0x208   :  { %vm725_vm7 = vcmp.gt.f32.partialorder %v2747_v58, 0.0 }
 0x209   :  { %v726_v2 = vsel %vm725_vm7, 1, %v2464_v36 }
 0x210   :  { %v2130_v53 = vpop.eup %2129 }
 0x211   :  { %539 = vrot.lane.b32.xlu0 %v2130_v53, %s2465_s22 }
 0x212   :  { %v2132_v55 = vpop.eup %2131 }
 0x213   :  { %v2134_v59 = vpop.eup %2133 }
 0x214   :  { %v533_v60 = vadd.f32 1.0, %v2134_v59  ;;  %v2136_v61 = vpop.eup %2135 }
 0x215   :  { %580 = vrot.lane.b32.xlu0 %v2132_v55, %s2465_s22  ;;  %v574_v62 = vadd.f32 1.0, %v2136_v61 }
 0x216   :  { %2137 = vrcp.f32 %v533_v60 }
 0x217   :  { %2139 = vrcp.f32 %v574_v62  ;;  %v2753_v62 = vld [vmem:[%s3203_s1 + $0xc] sm:$0x3] }
 0x218   :  { %vm766_vm8 = vcmp.gt.f32.partialorder %v2753_v62, 0.0 }
 0x219   :  { %557 = vperm.xlu0 %2127, %v555_v56  }
 0x223   :  { %v2138_v63 = vpop.eup %2137 }
 0x224   :  { %v2140_v3 = vpop.eup %2139  ;;  %v537_v7 = vmul.f32 0.0, %v2138_v63 }
 0x225   :  { %v578_v10 = vmul.f32 0.0, %v2140_v3 }
 0x283   :  { %v540_v0 = vpop.permute.xlu0 %539 }
 0x284   :  { %v542_v1 = vmul.f32 %v2138_v63, %v540_v0 }
 0x286   :  { %544 = vrot.lane.b32.xlu1 %v542_v1, %s2465_s22 }
 0x287   :  { %v581_v4 = vpop.permute.xlu0 %580 }
 0x288   :  { %v583_v5 = vmul.f32 %v2140_v3, %v581_v4 }
 0x28a   :  { %585 = vrot.lane.b32.xlu1 %v583_v5, %s2465_s22 }
 0x28e   :  { %598 = vperm.xlu1 %2128, %v596_v6  }
 0x294   :  { %v2707_v17 = vpop.permute.xlu0 %557 }
 0x295   :  { %vm559_vm4 = vcmp.eq.s32.totalorder %v2707_v17, 1  ;;  %v1869_v17 = vld [vmem:[#allocation16 + $0x10] sm:$0xff] }
 0x2f8   :  { %v545_v8 = vpop.permute.xlu1 %544 }
 0x2f9   :  { %v2697_v9 = vadd.f32 %v545_v8, %v537_v7 }
 0x2fb   :  { %2141 = vtanh.f32 %v2697_v9  ;;  %v2763_v4 = vsel %vm559_vm4, %v2697_v9, 0.0 }
 0x2fc   :  { %v586_v11 = vpop.permute.xlu1 %585 }
 0x2fd   :  { %v2700_v13 = vadd.f32 %v586_v11, %v578_v10 }
 0x2ff   :  { %2143 = vtanh.f32 %v2700_v13 }
 0x308   :  { %v2142_v14 = vpop.eup %2141 }
 0x309   :  { %550 = vrot.lane.b32.xlu1 %v2142_v14, %s2465_s22  ;;  %v2705_v16 = vpop.permute.xlu1 %598 }
 0x30a   :  { %vm600_vm5 = vcmp.eq.s32.totalorder %v2705_v16, 1 }
 0x30b   :  { %v2769_v7 = vsel %vm600_vm5, %v2700_v13, 0.0 }
 0x30c   :  { %v2144_v15 = vpop.eup %2143 }
 0x30d   :  { %591 = vrot.lane.b32.xlu0 %v2144_v15, %s2465_s22 }
 0x37b   :  { %v551_v18 = vpop.permute.xlu1 %550 }
 0x37c   :  { %v553_v19 = vmul.f32 %v2138_v63, %v551_v18 }
 0x37e   :  { %v2712_v37 = vsel %vm559_vm4, %v553_v19, 0.0 }
 0x37f   :  { %v592_v38 = vpop.permute.xlu0 %591  ;;  %611 = vrot.lane.b32.xlu1 %v2712_v37, %s2466_s24 }
 0x380   :  { %v594_v39 = vmul.f32 %v2140_v3, %v592_v38  ;;  %v767_v3 = vsel %vm766_vm8, 1, %v2464_v36 }
 0x382   :  { %v2719_v40 = vsel %vm600_vm5, %v594_v39, 0.0 }
 0x383   :  { %615 = vrot.lane.b32.xlu0 %v2719_v40, %s2467_s25 }
 0x3f1   :  { %v612_v41 = vpop.permute.xlu1 %611 }
 0x3f5   :  { %v616_v42 = vpop.permute.xlu0 %615 }
 0x3f6   :  { %v618_v43 = vsel %vm261_vm1, %v612_v41, %v616_v42 }
 0x3f7   :  { %1983 = vmatmul.mubr.msk.f32.vlgmr.msra.gmra.mxu0 %vm449_vm6, %v618_v43 }
 0x3f8   :  { %981 = vmatpush1.msra.mxu0 %v2594_v20  ;;  %1028 = vmatprep.mubr.f32.mxu0 %v2463_v24 }
 0x3f9   :  { %982 = vmatprep.subr.mxu0 %v2598_v21 }
 0x3fa   :  { %983 = vmatpush1.msra.mxu0 %v2602_v22 }
 0x3fb   :  { %984 = vmatprep.subr.mxu0 %v2605_v23 }
 0x3fc   :  { %985 = vmatpush1.msra.mxu0 %v2609_v25 }
 0x3fd   :  { %986 = vmatprep.subr.mxu0 %v2613_v26 }
 0x3fe   :  { %987 = vmatpush1.msra.mxu0 %v2617_v27 }
 0x3ff   :  { %988 = vmatprep.subr.mxu0 %v2621_v28 }
 0x400   :  { %989 = vmatpush1.msra.mxu0 %v2625_v29 }
 0x401   :  { %990 = vmatprep.subr.mxu0 %v2629_v30 }
 0x402   :  { %991 = vmatpush1.msra.mxu0 %v2633_v31 }
 0x403   :  { %992 = vmatprep.subr.mxu0 %v2637_v32 }
 0x404   :  { %993 = vmatpush1.msra.mxu0 %v2641_v33 }
 0x405   :  { %994 = vmatprep.subr.mxu0 %v2645_v34 }
 0x406   :  { %995 = vmatpush1.msra.mxu0 %v2649_v35 }
 0x407   :  { %1296 = vmatprep.subr.mxu0 %v2587_v12 }
 0x4b7   :  { %v688_v44 = vpop.f32.mrf.mxu0 }
 0x4b8   :  { %v695_v46 = vadd.f32 %v694_v45, %v688_v44 }
 0x4b9   :  { %v690_v47 = vpop.f32.mrf.mxu0 }
 0x4ba   :  { %2145 = vtanh.f32 %v695_v46  ;;  %v698_v49 = vadd.f32 %v697_v48, %v690_v47  ;;  %v1985_v52 = vmul.f32 -1.442695, %v695_v46  ;;  %v865_v48 = vld [vmem:[#allocation2 + $0x4] sm:$0x3] }
 0x4bc   :  { %2147 = vtanh.f32 %v698_v49  ;;  %v1987_v53 = vmul.f32 -1.442695, %v698_v49 }
 0x4bd   :  { %2149 = vpow2.f32 %v1985_v52 }
 0x4be   :  { %2151 = vpow2.f32 %v1987_v53 }
 0x4c7   :  { %v2146_v50 = vpop.eup %2145 }
 0x4c8   :  { %710 = vrot.lane.b32.xlu1 %v2146_v50, %s2465_s22 }
 0x4c9   :  { %v2148_v51 = vpop.eup %2147 }
 0x4ca   :  { %751 = vrot.lane.b32.xlu0 %v2148_v51, %s2465_s22  ;;  %v2150_v54 = vpop.eup %2149  ;;  %v868_v51 = vld [vmem:[#allocation3 + $0xa] sm:$0x3] }
 0x4cb   :  { %v2152_v55 = vpop.eup %2151  ;;  %v704_v56 = vadd.f32 1.0, %v2150_v54 }
 0x4cc   :  { %v745_v57 = vadd.f32 1.0, %v2152_v55 }
 0x4cd   :  { %2153 = vrcp.f32 %v704_v56 }
 0x4ce   :  { %2155 = vrcp.f32 %v745_v57 }
 0x4da   :  { %v2154_v59 = vpop.eup %2153 }
 0x4db   :  { %v2156_v63 = vpop.eup %2155  ;;  %v708_v5 = vmul.f32 %v2154_v59, %v2763_v4 }
 0x4dc   :  { %v749_v10 = vmul.f32 %v2156_v63, %v2769_v7 }
 0x53a   :  { %v711_v60 = vpop.permute.xlu1 %710 }
 0x53b   :  { %v713_v61 = vmul.f32 %v2154_v59, %v711_v60 }
 0x53c   :  { %v752_v0 = vpop.permute.xlu0 %751 }
 0x53d   :  { %715 = vrot.lane.b32.xlu1 %v713_v61, %s2465_s22  ;;  %v754_v1 = vmul.f32 %v2156_v63, %v752_v0 }
 0x53f   :  { %756 = vrot.lane.b32.xlu0 %v754_v1, %s2465_s22 }
 0x541   :  { %728 = vperm.xlu1 %2128, %v726_v2  }
 0x543   :  { %769 = vperm.xlu0 %2127, %v767_v3   ;;  %v2830_v3 = vld [vmem:[%s3203_s1 + $0xa] sm:$0x3] }
 0x544   :  { %vm937_vm12 = vcmp.gt.f32.partialorder %v2830_v3, 0.0 }
 0x5af   :  { %v716_v6 = vpop.permute.xlu1 %715 }
 0x5b0   :  { %v2771_v8 = vadd.f32 %v716_v6, %v708_v5 }
 0x5b1   :  { %v757_v11 = vpop.permute.xlu0 %756 }
 0x5b2   :  { %2157 = vtanh.f32 %v2771_v8  ;;  %v2775_v14 = vadd.f32 %v757_v11, %v749_v10 }
 0x5b4   :  { %2159 = vtanh.f32 %v2775_v14 }
 0x5bc   :  { %v2780_v18 = vpop.permute.xlu1 %728 }
 0x5bd   :  { %vm730_vm9 = vcmp.eq.s32.totalorder %v2780_v18, 1 }
 0x5be   :  { %v2782_v13 = vpop.permute.xlu0 %769 }
 0x5bf   :  { %v2158_v9 = vpop.eup %2157  ;;  %vm771_vm10 = vcmp.eq.s32.totalorder %v2782_v13, 1  ;;  %v1703_v13 = vld [vmem:[%s3211_s9 + $0x18] sm:$0xff] }
 0x5c0   :  { %721 = vrot.lane.b32.xlu1 %v2158_v9, %s2465_s22  ;;  %v938_v9 = vsel %vm937_vm12, 1, %v2464_v36 }
 0x5c1   :  { %v2160_v15 = vpop.eup %2159 }
 0x5c2   :  { %762 = vrot.lane.b32.xlu0 %v2160_v15, %s2465_s22  ;;  %v2841_v15 = vsel %vm730_vm9, %v2771_v8, %v2763_v4 }
 0x632   :  { %v722_v19 = vpop.permute.xlu1 %721 }
 0x633   :  { %v724_v38 = vmul.f32 %v2154_v59, %v722_v19 }
 0x634   :  { %v763_v39 = vpop.permute.xlu0 %762 }
 0x635   :  { %v2788_v41 = vsel %vm730_vm9, %v724_v38, %v2712_v37  ;;  %v765_v42 = vmul.f32 %v2156_v63, %v763_v39  ;;  %v2824_v63 = vld [vmem:[%s3203_s1 + $0x4] sm:$0x3] }
 0x636   :  { %782 = vrot.lane.b32.xlu1 %v2788_v41, %s2466_s24  ;;  %vm896_vm11 = vcmp.gt.f32.partialorder %v2824_v63, 0.0 }
 0x637   :  { %v2796_v43 = vsel %vm771_vm10, %v765_v42, %v2719_v40  ;;  %v897_v11 = vsel %vm896_vm11, 1, %v2464_v36  ;;  %v2850_v42 = vsel %vm771_vm10, %v2775_v14, %v2769_v7 }
 0x638   :  { %786 = vrot.lane.b32.xlu0 %v2796_v43, %s2467_s25 }
 0x6a8   :  { %v783_v44 = vpop.permute.xlu1 %782 }
 0x6aa   :  { %v787_v45 = vpop.permute.xlu0 %786 }
 0x6ab   :  { %v789_v46 = vsel %vm261_vm1, %v783_v44, %v787_v45 }
 0x6ac   :  { %1988 = vmatmul.mubr.msk.f32.vlgmr.msra.gmra.mxu1 %vm449_vm6, %v789_v46 }
 0x6ad   :  { %1152 = vmatpush1.msra.mxu1 %v2594_v20  ;;  %1199 = vmatprep.mubr.f32.mxu1 %v2463_v24 }
 0x6ae   :  { %1153 = vmatprep.subr.mxu1 %v2598_v21 }
 0x6af   :  { %1154 = vmatpush1.msra.mxu1 %v2602_v22 }
 0x6b0   :  { %1155 = vmatprep.subr.mxu1 %v2605_v23 }
 0x6b1   :  { %1156 = vmatpush1.msra.mxu1 %v2609_v25 }
 0x6b2   :  { %1157 = vmatprep.subr.mxu1 %v2613_v26 }
 0x6b3   :  { %1158 = vmatpush1.msra.mxu1 %v2617_v27 }
 0x6b4   :  { %1159 = vmatprep.subr.mxu1 %v2621_v28 }
 0x6b5   :  { %1160 = vmatpush1.msra.mxu1 %v2625_v29 }
 0x6b6   :  { %1161 = vmatprep.subr.mxu1 %v2629_v30 }
 0x6b7   :  { %1162 = vmatpush1.msra.mxu1 %v2633_v31 }
 0x6b8   :  { %1163 = vmatprep.subr.mxu1 %v2637_v32 }
 0x6b9   :  { %1164 = vmatpush1.msra.mxu1 %v2641_v33 }
 0x6ba   :  { %1165 = vmatprep.subr.mxu1 %v2645_v34 }
 0x6bb   :  { %1166 = vmatpush1.msra.mxu1 %v2649_v35 }
 0x6bc   :  { %1441 = vmatprep.subr.mxu1 %v2587_v12 }
 0x76c   :  { %v859_v47 = vpop.f32.mrf.mxu1 }
 0x76d   :  { %v866_v49 = vadd.f32 %v865_v48, %v859_v47 }
 0x76e   :  { %v861_v50 = vpop.f32.mrf.mxu1 }
 0x76f   :  { %2161 = vtanh.f32 %v866_v49  ;;  %v869_v52 = vadd.f32 %v868_v51, %v861_v50  ;;  %v1990_v55 = vmul.f32 -1.442695, %v866_v49 }
 0x771   :  { %2163 = vtanh.f32 %v869_v52  ;;  %v1992_v56 = vmul.f32 -1.442695, %v869_v52 }
 0x772   :  { %2165 = vpow2.f32 %v1990_v55 }
 0x773   :  { %2167 = vpow2.f32 %v1992_v56 }
 0x77c   :  { %v2162_v53 = vpop.eup %2161 }
 0x77d   :  { %881 = vrot.lane.b32.xlu1 %v2162_v53, %s2465_s22 }
 0x77e   :  { %v2164_v54 = vpop.eup %2163 }
 0x77f   :  { %922 = vrot.lane.b32.xlu0 %v2164_v54, %s2465_s22  ;;  %v2166_v57 = vpop.eup %2165 }
 0x780   :  { %v2168_v59 = vpop.eup %2167  ;;  %v875_v60 = vadd.f32 1.0, %v2166_v57  ;;  %v1036_v57 = vld [vmem:[#allocation2 + $0x6] sm:$0x3] }
 0x781   :  { %v916_v61 = vadd.f32 1.0, %v2168_v59 }
 0x782   :  { %2169 = vrcp.f32 %v875_v60 }
 0x783   :  { %2171 = vrcp.f32 %v916_v61  ;;  %v1039_v61 = vld [vmem:[#allocation3 + $0x8] sm:$0x3] }
 0x78f   :  { %v2170_v0 = vpop.eup %2169 }
 0x790   :  { %v2172_v5 = vpop.eup %2171  ;;  %v879_v19 = vmul.f32 %v2170_v0, %v2841_v15 }
 0x791   :  { %v920_v44 = vmul.f32 %v2172_v5, %v2850_v42 }
 0x7ef   :  { %v882_v1 = vpop.permute.xlu1 %881 }
 0x7f0   :  { %v884_v2 = vmul.f32 %v2170_v0, %v882_v1 }
 0x7f1   :  { %v923_v6 = vpop.permute.xlu0 %922 }
 0x7f2   :  { %886 = vrot.lane.b32.xlu1 %v884_v2, %s2465_s22  ;;  %v925_v10 = vmul.f32 %v2172_v5, %v923_v6 }
 0x7f4   :  { %927 = vrot.lane.b32.xlu0 %v925_v10, %s2465_s22 }
 0x7f6   :  { %899 = vperm.xlu1 %2128, %v897_v11  }
 0x7f8   :  { %940 = vperm.xlu0 %2127, %v938_v9  }
 0x864   :  { %v887_v38 = vpop.permute.xlu1 %886 }
 0x865   :  { %v2844_v39 = vadd.f32 %v887_v38, %v879_v19  ;;  %v2903_v19 = vld [vmem:[%s3203_s1 + $0x6] sm:$0x3] }
 0x866   :  { %v928_v45 = vpop.permute.xlu0 %927  ;;  %vm1067_vm15 = vcmp.gt.f32.partialorder %v2903_v19, 0.0 }
 0x867   :  { %2173 = vtanh.f32 %v2844_v39  ;;  %v2854_v46 = vadd.f32 %v928_v45, %v920_v44 }
 0x869   :  { %2175 = vtanh.f32 %v2854_v46 }
 0x871   :  { %v2859_v47 = vpop.permute.xlu1 %899 }
 0x872   :  { %vm901_vm13 = vcmp.eq.s32.totalorder %v2859_v47, 1 }
 0x873   :  { %v2861_v48 = vpop.permute.xlu0 %940 }
 0x874   :  { %v2174_v4 = vpop.eup %2173  ;;  %vm942_vm14 = vcmp.eq.s32.totalorder %v2861_v48, 1 }
 0x875   :  { %892 = vrot.lane.b32.xlu1 %v2174_v4, %s2465_s22  ;;  %v2909_v4 = vld [vmem:[%s3203_s1 + $0x8] sm:$0x3] }
 0x876   :  { %v2176_v8 = vpop.eup %2175  ;;  %vm1108_vm0 = vcmp.gt.f32.partialorder %v2909_v4, 0.0 }
 0x877   :  { %933 = vrot.lane.b32.xlu0 %v2176_v8, %s2465_s22 }
 0x8e7   :  { %v893_v7 = vpop.permute.xlu1 %892 }
 0x8e8   :  { %v895_v14 = vmul.f32 %v2170_v0, %v893_v7 }
 0x8e9   :  { %v934_v49 = vpop.permute.xlu0 %933 }
 0x8ea   :  { %v2867_v50 = vsel %vm901_vm13, %v895_v14, %v2788_v41  ;;  %v936_v51 = vmul.f32 %v2172_v5, %v934_v49  ;;  %v1068_v49 = vsel %vm1067_vm15, 1, %v2464_v36 }
 0x8eb   :  { %953 = vrot.lane.b32.xlu1 %v2867_v50, %s2466_s24 }
 0x8ec   :  { %v2875_v52 = vsel %vm942_vm14, %v936_v51, %v2796_v43  ;;  %v1109_v51 = vsel %vm1108_vm0, 1, %v2464_v36 }
 0x8ed   :  { %957 = vrot.lane.b32.xlu0 %v2875_v52, %s2467_s25 }
 0x95d   :  { %v954_v53 = vpop.permute.xlu1 %953 }
 0x95f   :  { %v958_v54 = vpop.permute.xlu0 %957 }
 0x960   :  { %v960_v55 = vsel %vm261_vm1, %v954_v53, %v958_v54  ;;  %v2920_v53 = vsel %vm901_vm13, %v2844_v39, %v2841_v15 }
 0x961   :  { %1993 = vmatmul.mubr.msk.f32.vlgmr.msra.gmra.mxu0 %vm449_vm6, %v960_v55 }
 0x962   :  { %1297 = vmatpush1.msra.mxu0 %v2594_v20  ;;  %1344 = vmatprep.mubr.f32.mxu0 %v2463_v24 }
 0x963   :  { %1298 = vmatprep.subr.mxu0 %v2598_v21 }
 0x964   :  { %1299 = vmatpush1.msra.mxu0 %v2602_v22 }
 0x965   :  { %1300 = vmatprep.subr.mxu0 %v2605_v23 }
 0x966   :  { %1301 = vmatpush1.msra.mxu0 %v2609_v25 }
 0x967   :  { %1302 = vmatprep.subr.mxu0 %v2613_v26 }
 0x968   :  { %1303 = vmatpush1.msra.mxu0 %v2617_v27 }
 0x969   :  { %1304 = vmatprep.subr.mxu0 %v2621_v28 }
 0x96a   :  { %1305 = vmatpush1.msra.mxu0 %v2625_v29 }
 0x96b   :  { %1306 = vmatprep.subr.mxu0 %v2629_v30 }
 0x96c   :  { %1307 = vmatpush1.msra.mxu0 %v2633_v31 }
 0x96d   :  { %1308 = vmatprep.subr.mxu0 %v2637_v32 }
 0x96e   :  { %1309 = vmatpush1.msra.mxu0 %v2641_v33 }
 0x96f   :  { %1310 = vmatprep.subr.mxu0 %v2645_v34 }
 0x970   :  { %1311 = vmatpush1.msra.mxu0 %v2649_v35 }
 0x971   :  { %1586 = vmatprep.subr.mxu0 %v2587_v12 }
 0xa21   :  { %v1030_v56 = vpop.f32.mrf.mxu0 }
 0xa22   :  { %v1037_v59 = vadd.f32 %v1036_v57, %v1030_v56  ;;  %v2929_v57 = vsel %vm942_vm14, %v2854_v46, %v2850_v42 }
 0xa23   :  { %v1032_v60 = vpop.f32.mrf.mxu0 }
 0xa24   :  { %2177 = vtanh.f32 %v1037_v59  ;;  %v1040_v0 = vadd.f32 %v1039_v61, %v1032_v60  ;;  %v1995_v5 = vmul.f32 -1.442695, %v1037_v59 }
 0xa26   :  { %2179 = vtanh.f32 %v1040_v0  ;;  %v1997_v6 = vmul.f32 -1.442695, %v1040_v0 }
 0xa27   :  { %2181 = vpow2.f32 %v1995_v5 }
 0xa28   :  { %2183 = vpow2.f32 %v1997_v6 }
 0xa31   :  { %v2178_v1 = vpop.eup %2177 }
 0xa32   :  { %1052 = vrot.lane.b32.xlu1 %v2178_v1, %s2465_s22 }
 0xa33   :  { %v2180_v2 = vpop.eup %2179 }
 0xa34   :  { %1093 = vrot.lane.b32.xlu0 %v2180_v2, %s2465_s22  ;;  %v2182_v10 = vpop.eup %2181 }
 0xa35   :  { %v2184_v12 = vpop.eup %2183  ;;  %v1046_v11 = vadd.f32 1.0, %v2182_v10 }
 0xa36   :  { %v1087_v9 = vadd.f32 1.0, %v2184_v12 }
 0xa37   :  { %2185 = vrcp.f32 %v1046_v11 }
 0xa38   :  { %2187 = vrcp.f32 %v1087_v9 }
 0xa44   :  { %v2186_v38 = vpop.eup %2185 }
 0xa45   :  { %v2188_v8 = vpop.eup %2187  ;;  %v1050_v54 = vmul.f32 %v2186_v38, %v2920_v53 }
 0xa46   :  { %v1091_v36 = vmul.f32 %v2188_v8, %v2929_v57 }
 0xaa4   :  { %v1053_v44 = vpop.permute.xlu1 %1052 }
 0xaa5   :  { %v1055_v45 = vmul.f32 %v2186_v38, %v1053_v44 }
 0xaa6   :  { %v1094_v7 = vpop.permute.xlu0 %1093 }
 0xaa7   :  { %1057 = vrot.lane.b32.xlu1 %v1055_v45, %s2465_s22  ;;  %v1096_v14 = vmul.f32 %v2188_v8, %v1094_v7 }
 0xaa9   :  { %1098 = vrot.lane.b32.xlu0 %v1096_v14, %s2465_s22 }
 0xaab   :  { %1070 = vperm.xlu1 %2128, %v1068_v49  }
 0xaad   :  { %1111 = vperm.xlu0 %2127, %v1109_v51  }
 0xb19   :  { %v1058_v55 = vpop.permute.xlu1 %1057 }
 0xb1a   :  { %v2923_v56 = vadd.f32 %v1058_v55, %v1050_v54 }
 0xb1b   :  { %v1099_v59 = vpop.permute.xlu0 %1098 }
 0xb1c   :  { %2189 = vtanh.f32 %v2923_v56  ;;  %v2933_v60 = vadd.f32 %v1099_v59, %v1091_v36 }
 0xb1e   :  { %2191 = vtanh.f32 %v2933_v60 }
 0xb26   :  { %v2938_v61 = vpop.permute.xlu1 %1070 }
 0xb27   :  { %vm1072_vm2 = vcmp.eq.s32.totalorder %v2938_v61, 1 }
 0xb28   :  { %v2940_v0 = vpop.permute.xlu0 %1111 }
 0xb29   :  { %v2190_v15 = vpop.eup %2189  ;;  %vm1113_vm3 = vcmp.eq.s32.totalorder %v2940_v0, 1 }
 0xb2a   :  { %1063 = vrot.lane.b32.xlu1 %v2190_v15, %s2465_s22 }
 0xb2b   :  { %v2192_v39 = vpop.eup %2191 }
 0xb2c   :  { %1104 = vrot.lane.b32.xlu0 %v2192_v39, %s2465_s22 }
 0xb9c   :  { %v1064_v42 = vpop.permute.xlu1 %1063 }
 0xb9d   :  { %v1066_v46 = vmul.f32 %v2186_v38, %v1064_v42  ;;  %v1207_v38 = vld [vmem:[#allocation2 + $0x8] sm:$0x3] }
 0xb9e   :  { %v1105_v1 = vpop.permute.xlu0 %1104 }
 0xb9f   :  { %v2946_v2 = vsel %vm1072_vm2, %v1066_v46, %v2867_v50  ;;  %v1107_v5 = vmul.f32 %v2188_v8, %v1105_v1  ;;  %v1210_v8 = vld [vmem:[#allocation3 + $0x6] sm:$0x3] }
 0xba0   :  { %1124 = vrot.lane.b32.xlu1 %v2946_v2, %s2466_s24 }
 0xba1   :  { %v2954_v6 = vsel %vm1113_vm3, %v1107_v5, %v2875_v52 }
 0xba2   :  { %1128 = vrot.lane.b32.xlu0 %v2954_v6, %s2467_s25 }
 0xc12   :  { %v1125_v10 = vpop.permute.xlu1 %1124 }
 0xc14   :  { %v1129_v12 = vpop.permute.xlu0 %1128 }
 0xc15   :  { %v1131_v11 = vsel %vm261_vm1, %v1125_v10, %v1129_v12  ;;  %v2985_v12 = vsel %vm1072_vm2, %v2923_v56, %v2920_v53 }
 0xc16   :  { %1998 = vmatmul.mubr.msk.f32.vlgmr.msra.gmra.mxu1 %vm449_vm6, %v1131_v11 }
 0xc17   :  { %1442 = vmatpush1.msra.mxu1 %v2594_v20  ;;  %1489 = vmatprep.mubr.f32.mxu1 %v2463_v24 }
 0xc18   :  { %1443 = vmatprep.subr.mxu1 %v2598_v21 }
 0xc19   :  { %1444 = vmatpush1.msra.mxu1 %v2602_v22 }
 0xc1a   :  { %1445 = vmatprep.subr.mxu1 %v2605_v23 }
 0xc1b   :  { %1446 = vmatpush1.msra.mxu1 %v2609_v25 }
 0xc1c   :  { %1447 = vmatprep.subr.mxu1 %v2613_v26 }
 0xc1d   :  { %1448 = vmatpush1.msra.mxu1 %v2617_v27 }
 0xc1e   :  { %1449 = vmatprep.subr.mxu1 %v2621_v28 }
 0xc1f   :  { %1450 = vmatpush1.msra.mxu1 %v2625_v29 }
 0xc20   :  { %1451 = vmatprep.subr.mxu1 %v2629_v30 }
 0xc21   :  { %1452 = vmatpush1.msra.mxu1 %v2633_v31 }
 0xc22   :  { %1453 = vmatprep.subr.mxu1 %v2637_v32 }
 0xc23   :  { %1454 = vmatpush1.msra.mxu1 %v2641_v33 }
 0xc24   :  { %1455 = vmatprep.subr.mxu1 %v2645_v34 }
 0xc25   :  { %1456 = vmatpush1.msra.mxu1 %v2649_v35 }
 0xc26   :  { %2075 = vmatprep.subr.mxu1 %v2463_v24 }
 0xcd6   :  { %v1201_v9 = vpop.f32.mrf.mxu1 }
 0xcd7   :  { %v1208_v44 = vadd.f32 %v1207_v38, %v1201_v9 }
 0xcd8   :  { %v1203_v45 = vpop.f32.mrf.mxu1 }
 0xcd9   :  { %2193 = vtanh.f32 %v1208_v44  ;;  %v1211_v7 = vadd.f32 %v1210_v8, %v1203_v45  ;;  %v1999_v51 = vmul.f32 -1.442695, %v1208_v44  ;;  %v2994_v44 = vsel %vm1113_vm3, %v2933_v60, %v2929_v57 }
 0xcdb   :  { %2195 = vtanh.f32 %v1211_v7  ;;  %v2000_v54 = vmul.f32 -1.442695, %v1211_v7 }
 0xcdc   :  { %2197 = vpow2.f32 %v1999_v51 }
 0xcdd   :  { %2199 = vpow2.f32 %v2000_v54 }
 0xce6   :  { %v2194_v14 = vpop.eup %2193 }
 0xce7   :  { %1221 = vrot.lane.b32.xlu1 %v2194_v14, %s2465_s22 }
 0xce8   :  { %v2196_v49 = vpop.eup %2195 }
 0xce9   :  { %1249 = vrot.lane.b32.xlu0 %v2196_v49, %s2465_s22  ;;  %v2198_v55 = vpop.eup %2197 }
 0xcea   :  { %v2200_v36 = vpop.eup %2199  ;;  %v1215_v59 = vadd.f32 1.0, %v2198_v55 }
 0xceb   :  { %v1243_v15 = vadd.f32 1.0, %v2200_v36 }
 0xcec   :  { %2201 = vrcp.f32 %v1215_v59 }
 0xced   :  { %2203 = vrcp.f32 %v1243_v15 }
 0xcf9   :  { %v2202_v39 = vpop.eup %2201 }
 0xcfa   :  { %v2204_v1 = vpop.eup %2203  ;;  %v1219_v11 = vmul.f32 %v2202_v39, %v2985_v12 }
 0xcfb   :  { %v1247_v45 = vmul.f32 %v2204_v1, %v2994_v44 }
 0xd59   :  { %v1222_v42 = vpop.permute.xlu1 %1221 }
 0xd5a   :  { %v1224_v46 = vmul.f32 %v2202_v39, %v1222_v42 }
 0xd5b   :  { %v1250_v5 = vpop.permute.xlu0 %1249 }
 0xd5c   :  { %1226 = vrot.lane.b32.xlu1 %v1224_v46, %s2465_s22  ;;  %v1252_v10 = vmul.f32 %v2204_v1, %v1250_v5 }
 0xd5e   :  { %1254 = vrot.lane.b32.xlu0 %v1252_v10, %s2465_s22 }
 0xdce   :  { %v1227_v9 = vpop.permute.xlu1 %1226 }
 0xdcf   :  { %v2988_v38 = vadd.f32 %v1227_v9, %v1219_v11 }
 0xdd0   :  { %v1255_v8 = vpop.permute.xlu0 %1254 }
 0xdd1   :  { %2205 = vtanh.f32 %v2988_v38  ;;  %v2998_v7 = vadd.f32 %v1255_v8, %v1247_v45  ;;  %v1237_v5 = vsel %vm1113_vm3, %v2988_v38, %v2985_v12 }
 0xdd3   :  { %2207 = vtanh.f32 %v2998_v7  ;;  %v1265_v45 = vsel %vm1072_vm2, %v2998_v7, %v2994_v44 }
 0xdde   :  { %v2206_v53 = vpop.eup %2205 }
 0xddf   :  { %1232 = vrot.lane.b32.xlu1 %v2206_v53, %s2465_s22 }
 0xde0   :  { %v2208_v56 = vpop.eup %2207 }
 0xde1   :  { %1260 = vrot.lane.b32.xlu0 %v2208_v56, %s2465_s22 }
 0xe51   :  { %v1233_v14 = vpop.permute.xlu1 %1232 }
 0xe52   :  { %v1235_v49 = vmul.f32 %v2202_v39, %v1233_v14 }
 0xe53   :  { %v1261_v51 = vpop.permute.xlu0 %1260 }
 0xe54   :  { %v3006_v57 = vsel %vm1113_vm3, %v1235_v49, %v2946_v2  ;;  %v1263_v60 = vmul.f32 %v2204_v1, %v1261_v51 }
 0xe55   :  { %1269 = vrot.lane.b32.xlu1 %v3006_v57, %s2466_s24 }
 0xe56   :  { %v3013_v54 = vsel %vm1072_vm2, %v1263_v60, %v2954_v6 }
 0xe57   :  { %1273 = vrot.lane.b32.xlu0 %v3013_v54, %s2467_s25 }
 0xec7   :  { %v1270_v55 = vpop.permute.xlu1 %1269 }
 0xec9   :  { %v1274_v36 = vpop.permute.xlu0 %1273 }
 0xeca   :  { %v1276_v59 = vsel %vm261_vm1, %v1270_v55, %v1274_v36 }
 0xecb   :  { %2001 = vmatmul.mubr.msk.f32.vlgmr.msra.gmra.mxu0 %vm449_vm6, %v1276_v59  ;;  %v1497_v59 = vld [vmem:[#allocation2 + $0xc] sm:$0x3] }
 0xecc   :  { %1587 = vmatpush1.msra.mxu0 %v2594_v20  ;;  %1634 = vmatprep.mubr.f32.mxu0 %v2463_v24 }
 0xecd   :  { %1588 = vmatprep.subr.mxu0 %v2598_v21  ;;  %v1352_v21 = vld [vmem:[#allocation2 + $0xa] sm:$0x3] }
 0xece   :  { %1589 = vmatpush1.msra.mxu0 %v2602_v22 }
 0xecf   :  { %1590 = vmatprep.subr.mxu0 %v2605_v23 }
 0xed0   :  { %1591 = vmatpush1.msra.mxu0 %v2609_v25  ;;  %v1355_v25 = vld [vmem:[#allocation3 + $0x4] sm:$0x3] }
 0xed1   :  { %1592 = vmatprep.subr.mxu0 %v2613_v26 }
 0xed2   :  { %1593 = vmatpush1.msra.mxu0 %v2617_v27 }
 0xed3   :  { %1594 = vmatprep.subr.mxu0 %v2621_v28 }
 0xed4   :  { %1595 = vmatpush1.msra.mxu0 %v2625_v29 }
 0xed5   :  { %1596 = vmatprep.subr.mxu0 %v2629_v30 }
 0xed6   :  { %1597 = vmatpush1.msra.mxu0 %v2633_v31 }
 0xed7   :  { %1598 = vmatprep.subr.mxu0 %v2637_v32 }
 0xed8   :  { %1599 = vmatpush1.msra.mxu0 %v2641_v33 }
 0xed9   :  { %1600 = vmatprep.subr.mxu0 %v2645_v34 }
 0xeda   :  { %1601 = vmatpush1.msra.mxu0 %v2649_v35 }
 0xedb   :  { %2086 = vmatprep.subr.mxu0 %v2463_v24 }
 0xf8b   :  { %v1346_v20 = vpop.f32.mrf.mxu0 }
 0xf8c   :  { %v1353_v22 = vadd.f32 %v1352_v21, %v1346_v20 }
 0xf8d   :  { %v1348_v23 = vpop.f32.mrf.mxu0 }
 0xf8e   :  { %2209 = vtanh.f32 %v1353_v22  ;;  %v1356_v26 = vadd.f32 %v1355_v25, %v1348_v23  ;;  %v2002_v29 = vmul.f32 -1.442695, %v1353_v22  ;;  %v1500_v22 = vld [vmem:[#allocation3 + $0x2] sm:$0x3] }
 0xf90   :  { %2211 = vtanh.f32 %v1356_v26  ;;  %v2003_v30 = vmul.f32 -1.442695, %v1356_v26 }
 0xf91   :  { %2213 = vpow2.f32 %v2002_v29 }
 0xf92   :  { %2215 = vpow2.f32 %v2003_v30 }
 0xf9b   :  { %v2210_v27 = vpop.eup %2209 }
 0xf9c   :  { %1366 = vrot.lane.b32.xlu1 %v2210_v27, %s2465_s22 }
 0xf9d   :  { %v2212_v28 = vpop.eup %2211 }
 0xf9e   :  { %1394 = vrot.lane.b32.xlu0 %v2212_v28, %s2465_s22  ;;  %v2214_v31 = vpop.eup %2213 }
 0xf9f   :  { %v2216_v32 = vpop.eup %2215  ;;  %v1360_v33 = vadd.f32 1.0, %v2214_v31 }
 0xfa0   :  { %v1388_v34 = vadd.f32 1.0, %v2216_v32 }
 0xfa1   :  { %2217 = vrcp.f32 %v1360_v33 }
 0xfa2   :  { %2219 = vrcp.f32 %v1388_v34 }
 0xfae   :  { %v2218_v35 = vpop.eup %2217 }
 0xfaf   :  { %v2220_v42 = vpop.eup %2219  ;;  %v1364_v10 = vmul.f32 %v2218_v35, %v1237_v5 }
 0xfb0   :  { %v1392_v8 = vmul.f32 %v2220_v42, %v1265_v45 }
0x100e   :  { %v1367_v15 = vpop.permute.xlu1 %1366 }
0x100f   :  { %v1369_v39 = vmul.f32 %v2218_v35, %v1367_v15 }
0x1010   :  { %v1395_v46 = vpop.permute.xlu0 %1394 }
0x1011   :  { %1371 = vrot.lane.b32.xlu1 %v1369_v39, %s2465_s22  ;;  %v1397_v1 = vmul.f32 %v2220_v42, %v1395_v46 }
0x1013   :  { %1399 = vrot.lane.b32.xlu0 %v1397_v1, %s2465_s22 }
0x1083   :  { %v1372_v11 = vpop.permute.xlu1 %1371 }
0x1084   :  { %v1374_v9 = vadd.f32 %v1372_v11, %v1364_v10 }
0x1085   :  { %v1400_v53 = vpop.permute.xlu0 %1399 }
0x1086   :  { %2221 = vtanh.f32 %v1374_v9  ;;  %v1402_v56 = vadd.f32 %v1400_v53, %v1392_v8  ;;  %v3072_v46 = vsel %vm942_vm14, %v1374_v9, %v1237_v5 }
0x1088   :  { %2223 = vtanh.f32 %v1402_v56  ;;  %v3079_v8 = vsel %vm901_vm13, %v1402_v56, %v1265_v45 }
0x1093   :  { %v2222_v14 = vpop.eup %2221 }
0x1094   :  { %1377 = vrot.lane.b32.xlu1 %v2222_v14, %s2465_s22 }
0x1095   :  { %v2224_v49 = vpop.eup %2223 }
0x1096   :  { %1405 = vrot.lane.b32.xlu0 %v2224_v49, %s2465_s22 }
0x1106   :  { %v1378_v0 = vpop.permute.xlu1 %1377 }
0x1107   :  { %v1380_v12 = vmul.f32 %v2218_v35, %v1378_v0 }
0x1108   :  { %v1406_v38 = vpop.permute.xlu0 %1405 }
0x1109   :  { %v3053_v51 = vsel %vm942_vm14, %v1380_v12, %v3006_v57  ;;  %v1408_v61 = vmul.f32 %v2220_v42, %v1406_v38 }
0x110a   :  { %1414 = vrot.lane.b32.xlu1 %v3053_v51, %s2466_s24 }
0x110b   :  { %v3060_v44 = vsel %vm901_vm13, %v1408_v61, %v3013_v54 }
0x110c   :  { %1418 = vrot.lane.b32.xlu0 %v3060_v44, %s2467_s25 }
0x117c   :  { %v1415_v7 = vpop.permute.xlu1 %1414 }
0x117e   :  { %v1419_v60 = vpop.permute.xlu0 %1418 }
0x117f   :  { %v1421_v55 = vsel %vm261_vm1, %v1415_v7, %v1419_v60 }
0x1180   :  { %2004 = vmatmul.mubr.msk.f32.vlgmr.msra.gmra.mxu1 %vm449_vm6, %v1421_v55  ;;  %v1642_v55 = vld [vmem:[#allocation2 + $0xe] sm:$0x3] }
0x1240   :  { %v1491_v36 = vpop.f32.mrf.mxu1 }
0x1241   :  { %v1498_v20 = vadd.f32 %v1497_v59, %v1491_v36 }
0x1242   :  { %v1493_v21 = vpop.f32.mrf.mxu1 }
0x1243   :  { %2225 = vtanh.f32 %v1498_v20  ;;  %v1501_v23 = vadd.f32 %v1500_v22, %v1493_v21  ;;  %v2005_v27 = vmul.f32 -1.442695, %v1498_v20  ;;  %v1644_v20 = vld [vmem:[#allocation3] sm:$0x3] }
0x1245   :  { %2227 = vtanh.f32 %v1501_v23  ;;  %v2006_v28 = vmul.f32 -1.442695, %v1501_v23 }
0x1246   :  { %2229 = vpow2.f32 %v2005_v27 }
0x1247   :  { %2231 = vpow2.f32 %v2006_v28 }
0x1250   :  { %v2226_v25 = vpop.eup %2225 }
0x1251   :  { %1511 = vrot.lane.b32.xlu1 %v2226_v25, %s2465_s22 }
0x1252   :  { %v2228_v26 = vpop.eup %2227 }
0x1253   :  { %1539 = vrot.lane.b32.xlu0 %v2228_v26, %s2465_s22  ;;  %v2230_v29 = vpop.eup %2229 }
0x1254   :  { %v2232_v30 = vpop.eup %2231  ;;  %v1505_v31 = vadd.f32 1.0, %v2230_v29 }
0x1255   :  { %v1533_v32 = vadd.f32 1.0, %v2232_v30 }
0x1256   :  { %2233 = vrcp.f32 %v1505_v31 }
0x1257   :  { %2235 = vrcp.f32 %v1533_v32 }
0x1263   :  { %v2234_v33 = vpop.eup %2233 }
0x1264   :  { %v2236_v15 = vpop.eup %2235  ;;  %v1509_v1 = vmul.f32 %v2234_v33, %v3072_v46 }
0x1265   :  { %v1537_v53 = vmul.f32 %v2236_v15, %v3079_v8 }
0x12c3   :  { %v1512_v34 = vpop.permute.xlu1 %1511 }
0x12c4   :  { %v1514_v35 = vmul.f32 %v2234_v33, %v1512_v34 }
0x12c5   :  { %v1540_v39 = vpop.permute.xlu0 %1539 }
0x12c6   :  { %1516 = vrot.lane.b32.xlu1 %v1514_v35, %s2465_s22  ;;  %v1542_v42 = vmul.f32 %v2236_v15, %v1540_v39  ;;  %v2257_v39 = vld [vmem:[%s3203_s1] sm:$0x3] }
0x12c8   :  { %1544 = vrot.lane.b32.xlu0 %v1542_v42, %s2465_s22  ;;  %v2258_v42 = vld [vmem:[%s3203_s1 + $0xe] sm:$0x3] }
0x1338   :  { %v1517_v10 = vpop.permute.xlu1 %1516 }
0x1339   :  { %v3075_v11 = vadd.f32 %v1517_v10, %v1509_v1 }
0x133a   :  { %v1545_v14 = vpop.permute.xlu0 %1544 }
0x133b   :  { %2237 = vtanh.f32 %v3075_v11  ;;  %v3083_v49 = vadd.f32 %v1545_v14, %v1537_v53  ;;  %v1527_v1 = vsel %vm771_vm10, %v3075_v11, %v3072_v46  ;;  %v1706_v46 = vld [vmem:[#allocation15 + $0x10] sm:$0xff]  ;;  %v1701_v11 = vld [vmem:[%s3211_s9 + $0x8] sm:$0xff] }
0x133d   :  { %2239 = vtanh.f32 %v3083_v49 }
0x1348   :  { %v2238_v48 = vpop.eup %2237 }
0x1349   :  { %1522 = vrot.lane.b32.xlu1 %v2238_v48, %s2465_s22 }
0x134a   :  { %v2240_v5 = vpop.eup %2239 }
0x134b   :  { %1550 = vrot.lane.b32.xlu0 %v2240_v5, %s2465_s22 }
0x13bb   :  { %v1523_v9 = vpop.permute.xlu1 %1522 }
0x13bc   :  { %v1525_v0 = vmul.f32 %v2234_v33, %v1523_v9 }
0x13bd   :  { %v1551_v47 = vpop.permute.xlu0 %1550 }
0x13be   :  { %v3091_v45 = vsel %vm771_vm10, %v1525_v0, %v3053_v51  ;;  %v1553_v56 = vmul.f32 %v2236_v15, %v1551_v47 }
0x13bf   :  { %1559 = vrot.lane.b32.xlu1 %v3091_v45, %s2466_s24 }
0x13c0   :  { %v3098_v12 = vsel %vm730_vm9, %v1553_v56, %v3060_v44 }
0x13c1   :  { %1563 = vrot.lane.b32.xlu0 %v3098_v12, %s2467_s25 }
0x1431   :  { %v1560_v38 = vpop.permute.xlu1 %1559 }
0x1433   :  { %v1564_v61 = vpop.permute.xlu0 %1563 }
0x1434   :  { %v1566_v7 = vsel %vm261_vm1, %v1560_v38, %v1564_v61 }
0x1435   :  { %2007 = vmatmul.mubr.msk.f32.vlgmr.msra.gmra.mxu0 %vm449_vm6, %v1566_v7  ;;  %vm2468_vm6 = vmmov 0  }
0x1436   :  { %2087 = vmatpush3.msra.mxu0 %v1703_v13  ;;  %2094 = vmatprep.mubr.msk.f32.mxu0 %vm2468_vm6, %v2463_v24  ;;  %v2012_v13 = vld [vmem:[%s3213_s11] ss:$0 sm:$0xff] }
0x1437   :  { %2088 = vmatprep.subr.mxu0 %v2463_v24  ;;  %2083 = vmatprep.mubr.msk.f32.mxu1 %vm2468_vm6, %v2463_v24 }
0x14f5   :  { %v1636_v60 = vpop.f32.mrf.mxu0 }
0x14f6   :  { %v1643_v36 = vadd.f32 %v1642_v55, %v1636_v60 }
0x14f7   :  { %v1638_v59 = vpop.f32.mrf.mxu0 }
0x14f8   :  { %2241 = vtanh.f32 %v1643_v36  ;;  %v1645_v21 = vadd.f32 %v1644_v20, %v1638_v59  ;;  %v2008_v25 = vmul.f32 -1.442695, %v1643_v36 }
0x14fa   :  { %2243 = vtanh.f32 %v1645_v21  ;;  %v2009_v26 = vmul.f32 -1.442695, %v1645_v21 }
0x14fb   :  { %2245 = vpow2.f32 %v2008_v25 }
0x14fc   :  { %2247 = vpow2.f32 %v2009_v26 }
0x1505   :  { %v2242_v22 = vpop.eup %2241 }
0x1506   :  { %1655 = vrot.lane.b32.xlu1 %v2242_v22, %s2465_s22 }
0x1507   :  { %v2244_v23 = vpop.eup %2243 }
0x1508   :  { %1682 = vrot.lane.b32.xlu0 %v2244_v23, %s2465_s22  ;;  %v2246_v27 = vpop.eup %2245 }
0x1509   :  { %v2248_v28 = vpop.eup %2247  ;;  %v1649_v29 = vadd.f32 1.0, %v2246_v27 }
0x150a   :  { %v1676_v30 = vadd.f32 1.0, %v2248_v28 }
0x150b   :  { %2249 = vrcp.f32 %v1649_v29 }
0x150c   :  { %2251 = vrcp.f32 %v1676_v30 }
0x1518   :  { %v3106_v31 = vpop.eup %2249 }
0x1519   :  { %v3109_v34 = vpop.eup %2251  ;;  %v1653_v10 = vmul.f32 %v3106_v31, %v1527_v1 }
0x1578   :  { %v1656_v32 = vpop.permute.xlu1 %1655 }
0x1579   :  { %v1658_v33 = vmul.f32 %v3106_v31, %v1656_v32 }
0x157a   :  { %v1683_v35 = vpop.permute.xlu0 %1682 }
0x157b   :  { %1660 = vrot.lane.b32.xlu1 %v1658_v33, %s2465_s22  ;;  %v1685_v15 = vmul.f32 %v3109_v34, %v1683_v35 }
0x157d   :  { %1687 = vrot.lane.b32.xlu0 %v1685_v15, %s2465_s22 }
0x157f   :  { %564 = vperm.xlu1 %2128, %v2257_v39  }
0x1581   :  { %605 = vperm.xlu0 %2127, %v2258_v42  }
0x1583   :  { %735 = vperm.xlu1 %2128, %v2747_v58   ;;  %v1555_v58 = vsel %vm730_vm9, %v3083_v49, %v3079_v8  ;;  %v1705_v8 = vld [vmem:[#allocation15 + $0x8] sm:$0xff]  ;;  %v1700_v49 = vld [vmem:[%s3211_s9] sm:$0xff] }
0x1585   :  { %776 = vperm.xlu0 %2127, %v2753_v62   ;;  %v1680_v62 = vmul.f32 %v3109_v34, %v1555_v58  ;;  %v1867_v58 = vld [vmem:[#allocation16] sm:$0xff] }
0x1587   :  { %906 = vperm.xlu1 %2128, %v2824_v63  }
0x1589   :  { %947 = vperm.xlu0 %2127, %v2830_v3  }
0x158b   :  { %1077 = vperm.xlu1 %2128, %v2903_v19   ;;  %v1707_v19 = vld [vmem:[#allocation15 + $0x18] sm:$0xff] }
0x158c   :  { %2076 = vmatpush3.msra.mxu1 %v1707_v19 }
0x158d   :  { %1118 = vperm.xlu0 %2127, %v2909_v4   ;;  %v1702_v4 = vld [vmem:[%s3211_s9 + $0x10] sm:$0xff]  ;;  %2077 = vmatprep.subr.mxu1 %v2463_v24 }
0x158e   :  { %2089 = vmatpush3.msra.mxu0 %v1702_v4  ;;  %2078 = vmatpush3.msra.mxu1 %v1706_v46 }
0x158f   :  { %2090 = vmatprep.subr.mxu0 %v2463_v24  ;;  %2079 = vmatprep.subr.mxu1 %v2463_v24 }
0x1590   :  { %2091 = vmatpush3.msra.mxu0 %v1701_v11  ;;  %2080 = vmatpush3.msra.mxu1 %v1705_v8  ;;  %v2013_v11 = vld [vmem:[%s3215_s13] ss:$0 sm:$0xff] }
0x1591   :  { %2092 = vmatprep.subr.mxu0 %v2463_v24  ;;  %2081 = vmatprep.subr.mxu1 %v2463_v24 }
0x1592   :  { %2093 = vmatpush3.msra.mxu0 %v1700_v49 }
0x15ed   :  { %v1661_v53 = vpop.permute.xlu1 %1660 }
0x15ee   :  { %v1663_v14 = vadd.f32 %v1661_v53, %v1653_v10 }
0x15ef   :  { %v1688_v63 = vpop.permute.xlu0 %1687 }
0x15f0   :  { %2253 = vtanh.f32 %v1663_v14  ;;  %v1690_v3 = vadd.f32 %v1688_v63, %v1680_v62 }
0x15f2   :  { %2255 = vtanh.f32 %v1690_v3 }
0x15fa   :  { %v565_v5 = vpop.permute.xlu1 %564 }
0x15fb   :  { %v567_v60 = vmul.f32 %v565_v5, %v2712_v37 }
0x15fc   :  { %v606_v9 = vpop.permute.xlu0 %605 }
0x15fd   :  { %v2254_v18 = vpop.eup %2253  ;;  %v608_v22 = vmul.f32 %v606_v9, %v2719_v40 }
0x15fe   :  { %1666 = vrot.lane.b32.xlu1 %v2254_v18, %s2465_s22  ;;  %v736_v0 = vpop.permute.xlu1 %735 }
0x15ff   :  { %v2256_v48 = vpop.eup %2255  ;;  %v738_v61 = vmul.f32 %v736_v0, %v2788_v41 }
0x1600   :  { %1693 = vrot.lane.b32.xlu0 %v2256_v48, %s2465_s22  ;;  %v777_v47 = vpop.permute.xlu0 %776 }
0x1601   :  { %v779_v36 = vmul.f32 %v777_v47, %v2796_v43  ;;  %v739_v59 = vadd.f32 %v738_v61, %v567_v60 }
0x1602   :  { %v907_v56 = vpop.permute.xlu1 %906 }
0x1603   :  { %v909_v55 = vmul.f32 %v907_v56, %v2867_v50  ;;  %v780_v26 = vadd.f32 %v779_v36, %v608_v22  ;;  %v1704_v50 = vld [vmem:[#allocation15] sm:$0xff]  ;;  %v1411_v33 = vmul.f32 %v3060_v44, %v907_v56 }
0x1604   :  { %v948_v38 = vpop.permute.xlu0 %947  ;;  %2082 = vmatpush3.msra.mxu1 %v1704_v50 }
0x1605   :  { %v950_v23 = vmul.f32 %v948_v38, %v2875_v52  ;;  %v910_v25 = vadd.f32 %v909_v55, %v739_v59  ;;  %2097 = vmatprep.subr.mxu1 %v2463_v24  ;;  %v1383_v40 = vmul.f32 %v3053_v51, %v948_v38  ;;  %v1556_v51 = vmul.f32 %v3098_v12, %v736_v0 }
0x1606   :  { %v1078_v7 = vpop.permute.xlu1 %1077 }
0x1607   :  { %v1080_v20 = vmul.f32 %v1078_v7, %v2946_v2  ;;  %v951_v37 = vadd.f32 %v950_v23, %v780_v26  ;;  %v1266_v43 = vmul.f32 %v3013_v54, %v1078_v7 }
0x1608   :  { %v1119_v21 = vpop.permute.xlu0 %1118 }
0x1609   :  { %v1121_v27 = vmul.f32 %v1119_v21, %v2954_v6  ;;  %v1081_v41 = vadd.f32 %v1080_v20, %v910_v25  ;;  %v1238_v28 = vmul.f32 %v3006_v57, %v1119_v21  ;;  %v1528_v57 = vmul.f32 %v3091_v45, %v777_v47 }
0x160b   :  { %v1122_v29 = vadd.f32 %v1121_v27, %v951_v37  ;;  %v1239_v30 = vadd.f32 %v1238_v28, %v1081_v41 }
0x160d   :  { %v1267_v2 = vadd.f32 %v1266_v43, %v1122_v29  ;;  %v1384_v52 = vadd.f32 %v1383_v40, %v1239_v30 }
0x160f   :  { %v1412_v35 = vadd.f32 %v1411_v33, %v1267_v2  ;;  %v1529_v42 = vadd.f32 %v1528_v57, %v1384_v52 }
0x1670   :  { %v1667_v32 = vpop.permute.xlu1 %1666 }
0x1671   :  { %v1669_v6 = vmul.f32 %v3106_v31, %v1667_v32  ;;  %v1557_v31 = vadd.f32 %v1556_v51, %v1412_v35 }
0x1672   :  { %v1694_v39 = vpop.permute.xlu0 %1693 }
0x1673   :  { %v1670_v15 = vsel %vm600_vm5, %v1669_v6, %v3091_v45  ;;  %v1696_v54 = vmul.f32 %v3109_v34, %v1694_v39  ;;  %v1870_v34 = vld [vmem:[#allocation16 + $0x18] sm:$0xff] }
0x1674   :  { %v1671_v1 = vmul.f32 %v1670_v15, %v606_v9 }
0x1675   :  { %v1697_v44 = vsel %vm559_vm4, %v1696_v54, %v3098_v12  ;;  %v1868_v12 = vld [vmem:[#allocation16 + $0x8] sm:$0xff] }
0x1676   :  { %v1672_v10 = vadd.f32 %v1671_v1, %v1529_v42  ;;  %v1698_v53 = vmul.f32 %v1697_v44, %v565_v5 }
0x1678   :  { %1784 = vrot.lane.b32.xlu0 %v1672_v10, %s2466_s24  ;;  %v1699_v14 = vadd.f32 %v1698_v53, %v1557_v31 }
0x167a   :  { %1709 = vrot.lane.b32.xlu1 %v1699_v14, %s2466_s24 }
0x16ea   :  { %v1785_v16 = vpop.permute.xlu0 %1784 }
0x16eb   :  { %2095 = vmatmul.mubr.msk.f32.vlgmr.msra.gmra.mxu0 %vm261_vm1, %v1785_v16 }
0x16ec   :  { %v1710_v45 = vpop.permute.xlu1 %1709 }
0x16ed   :  { %2084 = vmatmul.mubr.msk.f32.vlgmr.msra.gmra.mxu1 %vm261_vm1, %v1710_v45 }
0x16ee   :  { %2105 = vmatprep.mubr.msk.f32.mxu1 %vm2468_vm6, %v2463_v24  ;;  %2098 = vmatpush3.msra.mxu1 %v1870_v34 }
0x16ef   :  { %2099 = vmatprep.subr.mxu1 %v2463_v24 }
0x16f0   :  { %2100 = vmatpush3.msra.mxu1 %v1869_v17 }
0x16f1   :  { %2101 = vmatprep.subr.mxu1 %v2463_v24 }
0x16f2   :  { %2102 = vmatpush3.msra.mxu1 %v1868_v12 }
0x16f3   :  { %2103 = vmatprep.subr.mxu1 %v2463_v24 }
0x16f4   :  { %2104 = vmatpush3.msra.mxu1 %v1867_v58 }
0x17ab   :  { %v1854_v62 = vpop.f32.mrf.mxu0 }
0x17ad   :  { %v2096_v63 = vpop.f32.mrf.mxu0  ;;  %v1779_v3 = vpop.f32.mrf.mxu1 }
0x17ae   :  { %v1855_v19 = vadd.f32 %v1854_v62, %v1779_v3 }
0x17af   :  { %v2085_v4 = vpop.f32.mrf.mxu1 }
0x17b0   :  { %v1865_v46 = vadd.f32 %v2012_v13, %v1855_v19 }
0x17b2   :  { %v1866_v18 = vmax.f32 %v1865_v46, 0.0 }
0x17b4   :  { %2106 = vmatmul.mubr.msk.f32.vlgmr.msra.gmra.mxu1 %vm261_vm1, %v1866_v18 }
0x1874   :  { %v1947_v24 = vpop.f32.mrf.mxu1 }
0x1875   :  { %v1948_v8 = vadd.f32 %v2013_v11, %v1947_v24 }
0x1876   :  { %v2107_v49 = vpop.f32.mrf.mxu1 }
0x1877   :  { %1951 = vst [vmem:[#allocation18] sm:$0x3] %v1948_v8 }
0x1878   :  { %2430 = shalt.err (!%p2427_p2)
}
0x1879   :  { %1961 = dma.vmem_to_hbm [thread:$0]  %s1959_s27, 32, %s3216_s14, [#allocation6]  }
0x187a   :  { %2449 = dma.done.wait [#allocation6], 32  }
0x187b   :  { %2450 = vsyncadd [#allocation6], 4294967264 }
0x187c   :  { %1965 = vsyncpa [#allocation5], 1 }
0x187d   :  { %1966 = vsyncpa [#allocation8], 1 }
0x187e   :  { %1967 = vsyncpa [#allocation11], 1 }
0x187f   :  { %1968 = vsyncpa [#allocation14], 1 }
0x1880   :  { %1969 = vsyncpa [#allocation17], 1 }
0x1881   :  { %1970 = vsyncpa [#allocation6], 1 }

</bundles_post_ra>
